<compile_context>
chip_gen: v7x
topology: tpu7x:2x2x1
jax: 0.10.0
libtpu: 0.0.40
codegen_flags: <defaults>
</compile_context>

<pallas_src>
import functools

import jax
import jax.numpy as jnp
from jax.experimental import pallas as pl
from jax.experimental.pallas import tpu as pltpu


LANE = 128  # TPU lane width; every matmul dim is padded to a multiple of this.


def _round_up(n, m=LANE):
    return ((n + m - 1) // m) * m


def _mlp_kernel(x_ref, *refs, num_layers):
    """Whole-MLP fused kernel with manually overlapped weight DMAs.

    refs layout:
      refs[0:L]        shift_i  : [1, N_i] f32 VMEM (folded bias + BN shift)
      refs[L:2L]       w_hbm_i  : [K_i, N_i] bf16 HBM (BN scale folded into cols)
      refs[2L]         o_ref    : [B, 128] f32 VMEM (lane-dense logits slab)
      refs[2L+1:3L+1]  wbuf_i   : VMEM scratch, one per weight shape
      refs[3L+1]       sem      : DMA semaphores, one per layer
    """
    L = num_layers
    sh_refs = refs[0:L]
    w_hbm = refs[L:2 * L]
    o_ref = refs[2 * L]
    wbufs = refs[2 * L + 1:3 * L + 1]
    sem = refs[3 * L + 1]

    # Issue every weight DMA up front; they land in issue order while the MXU
    # works through earlier layers (overlap weight fetch with compute).
    copies = []
    for li in range(L):
        cp = pltpu.make_async_copy(w_hbm[li], wbufs[li], sem.at[li])
        cp.start()
        copies.append(cp)

    # In-kernel f32 -> bf16 cast: free VPU work hidden under the W1 DMA.
    h = x_ref[...].astype(jnp.bfloat16)

    for li in range(L):
        copies[li].wait()  # only block on the weight this layer actually needs
        # MXU matmul with f32 accumulation, then the folded (bias + BN) shift.
        y = jnp.dot(h, wbufs[li][...], preferred_element_type=jnp.float32) + sh_refs[li][...]
        if li < L - 1:
            # ReLU in f32, then downcast (v5e-friendly).  Dropout(0.4) is the
            # identity in eval mode.
            h = jnp.maximum(y, 0.0).astype(jnp.bfloat16)
        else:
            o_ref[...] = y.astype(o_ref.dtype)


def dnn_classifier_forward(x, folded_params, num_classes):
    """Run the fused 6-layer MLP. `folded_params` comes from fold_params()."""
    B, F = x.shape
    L = len(folded_params)
    weights = [w for w, _ in folded_params]
    shifts = [sh for _, sh in folded_params]
    k_pad = weights[0].shape[0]
    n_out_pad = weights[-1].shape[1]

    # Lane-pad the input features (32 -> 128) with zero columns; the matching
    # padded rows of W1 are also zero, so the result is unchanged.
    x_pad = jnp.pad(x, ((0, 0), (0, k_pad - F))) if k_pad != F else x

    flops = sum(2 * B * w.shape[0] * w.shape[1] for w in weights)
    bytes_accessed = (x_pad.size * 4
                      + sum(w.size * 2 for w in weights)
                      + sum(sh.size * 4 for sh in shifts)
                      + B * n_out_pad * 4)

    kernel = functools.partial(_mlp_kernel, num_layers=L)
    out_padded = pl.pallas_call(
        kernel,
        out_shape=jax.ShapeDtypeStruct((B, n_out_pad), jnp.float32),
        in_specs=(
            [pl.BlockSpec(memory_space=pltpu.MemorySpace.VMEM)]          # x
            + [pl.BlockSpec(memory_space=pltpu.MemorySpace.VMEM)] * L    # shifts (tiny)
            + [pl.BlockSpec(memory_space=pl.ANY)] * L                    # weights stay in HBM
        ),
        out_specs=pl.BlockSpec(memory_space=pltpu.MemorySpace.VMEM),
        scratch_shapes=(
            [pltpu.VMEM(w.shape, jnp.bfloat16) for w in weights]         # per-layer landing buffers
            + [pltpu.SemaphoreType.DMA((L,))]
        ),
        cost_estimate=pl.CostEstimate(
            flops=flops, transcendentals=0, bytes_accessed=bytes_accessed),
    )(x_pad, *shifts, *weights)
    return out_padded[:, :num_classes]


def init_params(key, in_features, num_classes):
    """Deterministic synthetic parameters matching the PyTorch module's shapes.

    Weights are stored transposed vs. PyTorch ([in, out]) so the kernel computes
    x @ W + b directly.  BN layers use default eval-mode running stats.
    """
    dims = [in_features, 1024, 512, 256, 128, 64, num_classes]
    params = []
    for li in range(6):
        key, k_w, k_b = jax.random.split(key, 3)
        fan_in, fan_out = dims[li], dims[li + 1]
        bound = 1.0 / jnp.sqrt(jnp.float32(fan_in))
        w = jax.random.uniform(k_w, (fan_in, fan_out), jnp.float32, -bound, bound)
        b = jax.random.uniform(k_b, (fan_out,), jnp.float32, -bound, bound)
        if li < 5:
            gamma = jnp.ones((fan_out,), jnp.float32)
            beta = jnp.zeros((fan_out,), jnp.float32)
            running_mean = jnp.zeros((fan_out,), jnp.float32)
            running_var = jnp.ones((fan_out,), jnp.float32)
            bn = (gamma, beta, running_mean, running_var, 1e-5)
        else:
            bn = None
        params.append((w, b, bn))
    return params


def fold_params(params):
    """Fold eval-mode BN + bias into (W', shift'); bf16 weights, f32 shifts.

    Every dim is zero-padded up to a multiple of 128 (lane width).  Padded
    weight rows/cols and padded shift entries are zero, so padded columns stay
    exactly zero through ReLU and cannot leak into later layers.
    """
    folded = []
    for w, b, bn in params:
        if bn is not None:
            gamma, beta, mean, var, eps = bn
            scale = gamma / jnp.sqrt(var + eps)
            shift = beta - mean * scale
            w_f = w * scale[None, :]
            sh_f = b * scale + shift
        else:
            w_f, sh_f = w, b
        k, n = w_f.shape
        kp, np_ = _round_up(k), _round_up(n)
        w_f = jnp.pad(w_f, ((0, kp - k), (0, np_ - n)))
        sh_f = jnp.pad(sh_f, (0, np_ - n))
        folded.append(
            (w_f.astype(jnp.bfloat16), sh_f.reshape(1, -1).astype(jnp.float32)))
    return folded


def reference_forward_folded(x, folded_params, num_classes):
    """Pure-JAX reference with the same folded params / bf16 rounding as the kernel."""
    k_pad = folded_params[0][0].shape[0]
    h = jnp.pad(x, ((0, 0), (0, k_pad - x.shape[1]))).astype(jnp.bfloat16)
    L = len(folded_params)
    for li, (w, sh) in enumerate(folded_params):
        y = jnp.dot(h.astype(jnp.float32), w.astype(jnp.float32)) + sh
        h = jnp.maximum(y, 0.0).astype(jnp.bfloat16) if li < L - 1 else y
    return h[:, :num_classes]


def reference_forward_f32(x, params, num_classes):
    """Unfused f32 Linear -> BatchNorm1d(eval) -> ReLU baseline from raw params."""
    h = x
    L = len(params)
    for li, (w, b, bn) in enumerate(params):
        y = h @ w + b
        if bn is not None:
            gamma, beta, mean, var, eps = bn
            y = (y - mean) / jnp.sqrt(var + eps) * gamma + beta
        # Dropout(0.4) is the identity in eval mode.
        h = jnp.maximum(y, 0.0) if li < L - 1 else y
    return h[:, :num_classes]


if __name__ == "__main__":
    key = jax.random.PRNGKey(0)
    k_x, k_p = jax.random.split(key)

    batch = 8
    in_features = 32       # stand-in for X_train.shape[1]
    num_classes = 5        # stand-in for len(np.unique(y_train))

    x = jax.random.normal(k_x, (batch, in_features), jnp.float32)
    params = init_params(k_p, in_features, num_classes)
    folded = fold_params(params)

    out = dnn_classifier_forward(x, folded, num_classes)
    out = jax.block_until_ready(out)
    assert out.shape == (batch, num_classes)

    # Tight check: kernel vs. pure-JAX with identical folded/bf16 parameters.
    ref_folded = reference_forward_folded(x, folded, num_classes)
    assert jnp.allclose(out, ref_folded, atol=1e-2, rtol=1e-2), (
        float(jnp.max(jnp.abs(out - ref_folded))))

    # Looser check: kernel vs. unfused f32 Linear->BN->ReLU baseline (validates
    # the BN folding + padding; slack covers bf16 weight/activation rounding).
    ref_f32 = reference_forward_f32(x, params, num_classes)
    assert jnp.allclose(out, ref_f32, atol=1e-1, rtol=1e-1), (
        float(jnp.max(jnp.abs(out - ref_f32))))

    print("KERNEL_OK")
</pallas_src>

<mosaic_0001>
module attributes {stable_mosaic.version = 11 : i64} {
  func.func @_mlp_kernel(%arg0: memref<8x128xf32, #tpu.memory_space<vmem>>, %arg1: memref<1x1024xf32, #tpu.memory_space<vmem>>, %arg2: memref<1x512xf32, #tpu.memory_space<vmem>>, %arg3: memref<1x256xf32, #tpu.memory_space<vmem>>, %arg4: memref<1x128xf32, #tpu.memory_space<vmem>>, %arg5: memref<1x128xf32, #tpu.memory_space<vmem>>, %arg6: memref<1x128xf32, #tpu.memory_space<vmem>>, %arg7: memref<128x1024xbf16, #tpu.memory_space<any>>, %arg8: memref<1024x512xbf16, #tpu.memory_space<any>>, %arg9: memref<512x256xbf16, #tpu.memory_space<any>>, %arg10: memref<256x128xbf16, #tpu.memory_space<any>>, %arg11: memref<128x128xbf16, #tpu.memory_space<any>>, %arg12: memref<128x128xbf16, #tpu.memory_space<any>>, %arg13: memref<8x128xf32, #tpu.memory_space<vmem>>, %arg14: memref<128x1024xbf16, #tpu.memory_space<vmem>>, %arg15: memref<1024x512xbf16, #tpu.memory_space<vmem>>, %arg16: memref<512x256xbf16, #tpu.memory_space<vmem>>, %arg17: memref<256x128xbf16, #tpu.memory_space<vmem>>, %arg18: memref<128x128xbf16, #tpu.memory_space<vmem>>, %arg19: memref<128x128xbf16, #tpu.memory_space<vmem>>, %arg20: memref<6x!tpu.dma_semaphore, #tpu.memory_space<semaphore_mem>>) attributes {dimension_semantics = [], scalar_prefetch = 0 : i64, scratch_operands = 7 : i64, tpu.core_type = #tpu.core_type<tc>} {
    %c0_i32 = arith.constant 0 : i32
    %0 = tpu.memref_slice %arg20[%c0_i32] : memref<6x!tpu.dma_semaphore, #tpu.memory_space<semaphore_mem>> -> memref<1x!tpu.dma_semaphore, #tpu.memory_space<semaphore_mem>>
    %1 = tpu.memref_squeeze %0 : memref<1x!tpu.dma_semaphore, #tpu.memory_space<semaphore_mem>> -> memref<!tpu.dma_semaphore, #tpu.memory_space<semaphore_mem>>
    tpu.enqueue_dma source(%arg7 : memref<128x1024xbf16, #tpu.memory_space<any>>) target(%arg14 : memref<128x1024xbf16, #tpu.memory_space<vmem>>) target_semaphore(%1 : memref<!tpu.dma_semaphore, #tpu.memory_space<semaphore_mem>>)
    %c1_i32 = arith.constant 1 : i32
    %2 = tpu.memref_slice %arg20[%c1_i32] : memref<6x!tpu.dma_semaphore, #tpu.memory_space<semaphore_mem>> -> memref<1x!tpu.dma_semaphore, #tpu.memory_space<semaphore_mem>>
    %3 = tpu.memref_squeeze %2 : memref<1x!tpu.dma_semaphore, #tpu.memory_space<semaphore_mem>> -> memref<!tpu.dma_semaphore, #tpu.memory_space<semaphore_mem>>
    tpu.enqueue_dma source(%arg8 : memref<1024x512xbf16, #tpu.memory_space<any>>) target(%arg15 : memref<1024x512xbf16, #tpu.memory_space<vmem>>) target_semaphore(%3 : memref<!tpu.dma_semaphore, #tpu.memory_space<semaphore_mem>>)
    %c2_i32 = arith.constant 2 : i32
    %4 = tpu.memref_slice %arg20[%c2_i32] : memref<6x!tpu.dma_semaphore, #tpu.memory_space<semaphore_mem>> -> memref<1x!tpu.dma_semaphore, #tpu.memory_space<semaphore_mem>>
    %5 = tpu.memref_squeeze %4 : memref<1x!tpu.dma_semaphore, #tpu.memory_space<semaphore_mem>> -> memref<!tpu.dma_semaphore, #tpu.memory_space<semaphore_mem>>
    tpu.enqueue_dma source(%arg9 : memref<512x256xbf16, #tpu.memory_space<any>>) target(%arg16 : memref<512x256xbf16, #tpu.memory_space<vmem>>) target_semaphore(%5 : memref<!tpu.dma_semaphore, #tpu.memory_space<semaphore_mem>>)
    %c3_i32 = arith.constant 3 : i32
    %6 = tpu.memref_slice %arg20[%c3_i32] : memref<6x!tpu.dma_semaphore, #tpu.memory_space<semaphore_mem>> -> memref<1x!tpu.dma_semaphore, #tpu.memory_space<semaphore_mem>>
    %7 = tpu.memref_squeeze %6 : memref<1x!tpu.dma_semaphore, #tpu.memory_space<semaphore_mem>> -> memref<!tpu.dma_semaphore, #tpu.memory_space<semaphore_mem>>
    tpu.enqueue_dma source(%arg10 : memref<256x128xbf16, #tpu.memory_space<any>>) target(%arg17 : memref<256x128xbf16, #tpu.memory_space<vmem>>) target_semaphore(%7 : memref<!tpu.dma_semaphore, #tpu.memory_space<semaphore_mem>>)
    %c4_i32 = arith.constant 4 : i32
    %8 = tpu.memref_slice %arg20[%c4_i32] : memref<6x!tpu.dma_semaphore, #tpu.memory_space<semaphore_mem>> -> memref<1x!tpu.dma_semaphore, #tpu.memory_space<semaphore_mem>>
    %9 = tpu.memref_squeeze %8 : memref<1x!tpu.dma_semaphore, #tpu.memory_space<semaphore_mem>> -> memref<!tpu.dma_semaphore, #tpu.memory_space<semaphore_mem>>
    tpu.enqueue_dma source(%arg11 : memref<128x128xbf16, #tpu.memory_space<any>>) target(%arg18 : memref<128x128xbf16, #tpu.memory_space<vmem>>) target_semaphore(%9 : memref<!tpu.dma_semaphore, #tpu.memory_space<semaphore_mem>>)
    %c5_i32 = arith.constant 5 : i32
    %10 = tpu.memref_slice %arg20[%c5_i32] : memref<6x!tpu.dma_semaphore, #tpu.memory_space<semaphore_mem>> -> memref<1x!tpu.dma_semaphore, #tpu.memory_space<semaphore_mem>>
    %11 = tpu.memref_squeeze %10 : memref<1x!tpu.dma_semaphore, #tpu.memory_space<semaphore_mem>> -> memref<!tpu.dma_semaphore, #tpu.memory_space<semaphore_mem>>
    tpu.enqueue_dma source(%arg12 : memref<128x128xbf16, #tpu.memory_space<any>>) target(%arg19 : memref<128x128xbf16, #tpu.memory_space<vmem>>) target_semaphore(%11 : memref<!tpu.dma_semaphore, #tpu.memory_space<semaphore_mem>>)
    %c0 = arith.constant 0 : index
    %c0_0 = arith.constant 0 : index
    %12 = vector.load %arg0[%c0, %c0_0] : memref<8x128xf32, #tpu.memory_space<vmem>>, vector<8x128xf32>
    %13 = arith.truncf %12 : vector<8x128xf32> to vector<8x128xbf16>
    %c0_i32_1 = arith.constant 0 : i32
    %14 = tpu.memref_slice %arg20[%c0_i32_1] : memref<6x!tpu.dma_semaphore, #tpu.memory_space<semaphore_mem>> -> memref<1x!tpu.dma_semaphore, #tpu.memory_space<semaphore_mem>>
    %15 = tpu.memref_squeeze %14 : memref<1x!tpu.dma_semaphore, #tpu.memory_space<semaphore_mem>> -> memref<!tpu.dma_semaphore, #tpu.memory_space<semaphore_mem>>
    tpu.wait_dma2 semaphore(%15 : memref<!tpu.dma_semaphore, #tpu.memory_space<semaphore_mem>>) src(%arg7 : memref<128x1024xbf16, #tpu.memory_space<any>>) dst(%arg14 : memref<128x1024xbf16, #tpu.memory_space<vmem>>)
    %c0_2 = arith.constant 0 : index
    %c0_3 = arith.constant 0 : index
    %16 = vector.load %arg14[%c0_2, %c0_3] : memref<128x1024xbf16, #tpu.memory_space<vmem>>, vector<128x1024xbf16>
    %cst = arith.constant dense<0.000000e+00> : vector<8x1024xf32>
    %17 = tpu.matmul %13, %16, %cst {dimension_numbers = #tpu.dot_dimension_numbers<[1], [0], [0], [1], [0, 0, 1, 1], [], []>} : vector<8x128xbf16>, vector<128x1024xbf16>, vector<8x1024xf32> -> vector<8x1024xf32>
    %c0_4 = arith.constant 0 : index
    %c0_5 = arith.constant 0 : index
    %18 = vector.load %arg1[%c0_4, %c0_5] : memref<1x1024xf32, #tpu.memory_space<vmem>>, vector<1x1024xf32>
    %19 = vector.broadcast %18 : vector<1x1024xf32> to vector<8x1024xf32>
    %20 = arith.addf %17, %19 : vector<8x1024xf32>
    %cst_6 = arith.constant 0.000000e+00 : f32
    %21 = vector.broadcast %cst_6 : f32 to vector<8x1024xf32>
    %22 = arith.maximumf %20, %21 : vector<8x1024xf32>
    %23 = arith.truncf %22 : vector<8x1024xf32> to vector<8x1024xbf16>
    %c1_i32_7 = arith.constant 1 : i32
    %24 = tpu.memref_slice %arg20[%c1_i32_7] : memref<6x!tpu.dma_semaphore, #tpu.memory_space<semaphore_mem>> -> memref<1x!tpu.dma_semaphore, #tpu.memory_space<semaphore_mem>>
    %25 = tpu.memref_squeeze %24 : memref<1x!tpu.dma_semaphore, #tpu.memory_space<semaphore_mem>> -> memref<!tpu.dma_semaphore, #tpu.memory_space<semaphore_mem>>
    tpu.wait_dma2 semaphore(%25 : memref<!tpu.dma_semaphore, #tpu.memory_space<semaphore_mem>>) src(%arg8 : memref<1024x512xbf16, #tpu.memory_space<any>>) dst(%arg15 : memref<1024x512xbf16, #tpu.memory_space<vmem>>)
    %c0_8 = arith.constant 0 : index
    %c0_9 = arith.constant 0 : index
    %26 = vector.load %arg15[%c0_8, %c0_9] : memref<1024x512xbf16, #tpu.memory_space<vmem>>, vector<1024x512xbf16>
    %cst_10 = arith.constant dense<0.000000e+00> : vector<8x512xf32>
    %27 = tpu.matmul %23, %26, %cst_10 {dimension_numbers = #tpu.dot_dimension_numbers<[1], [0], [0], [1], [0, 0, 1, 1], [], []>} : vector<8x1024xbf16>, vector<1024x512xbf16>, vector<8x512xf32> -> vector<8x512xf32>
    %c0_11 = arith.constant 0 : index
    %c0_12 = arith.constant 0 : index
    %28 = vector.load %arg2[%c0_11, %c0_12] : memref<1x512xf32, #tpu.memory_space<vmem>>, vector<1x512xf32>
    %29 = vector.broadcast %28 : vector<1x512xf32> to vector<8x512xf32>
    %30 = arith.addf %27, %29 : vector<8x512xf32>
    %cst_13 = arith.constant 0.000000e+00 : f32
    %31 = vector.broadcast %cst_13 : f32 to vector<8x512xf32>
    %32 = arith.maximumf %30, %31 : vector<8x512xf32>
    %33 = arith.truncf %32 : vector<8x512xf32> to vector<8x512xbf16>
    %c2_i32_14 = arith.constant 2 : i32
    %34 = tpu.memref_slice %arg20[%c2_i32_14] : memref<6x!tpu.dma_semaphore, #tpu.memory_space<semaphore_mem>> -> memref<1x!tpu.dma_semaphore, #tpu.memory_space<semaphore_mem>>
    %35 = tpu.memref_squeeze %34 : memref<1x!tpu.dma_semaphore, #tpu.memory_space<semaphore_mem>> -> memref<!tpu.dma_semaphore, #tpu.memory_space<semaphore_mem>>
    tpu.wait_dma2 semaphore(%35 : memref<!tpu.dma_semaphore, #tpu.memory_space<semaphore_mem>>) src(%arg9 : memref<512x256xbf16, #tpu.memory_space<any>>) dst(%arg16 : memref<512x256xbf16, #tpu.memory_space<vmem>>)
    %c0_15 = arith.constant 0 : index
    %c0_16 = arith.constant 0 : index
    %36 = vector.load %arg16[%c0_15, %c0_16] : memref<512x256xbf16, #tpu.memory_space<vmem>>, vector<512x256xbf16>
    %cst_17 = arith.constant dense<0.000000e+00> : vector<8x256xf32>
    %37 = tpu.matmul %33, %36, %cst_17 {dimension_numbers = #tpu.dot_dimension_numbers<[1], [0], [0], [1], [0, 0, 1, 1], [], []>} : vector<8x512xbf16>, vector<512x256xbf16>, vector<8x256xf32> -> vector<8x256xf32>
    %c0_18 = arith.constant 0 : index
    %c0_19 = arith.constant 0 : index
    %38 = vector.load %arg3[%c0_18, %c0_19] : memref<1x256xf32, #tpu.memory_space<vmem>>, vector<1x256xf32>
    %39 = vector.broadcast %38 : vector<1x256xf32> to vector<8x256xf32>
    %40 = arith.addf %37, %39 : vector<8x256xf32>
    %cst_20 = arith.constant 0.000000e+00 : f32
    %41 = vector.broadcast %cst_20 : f32 to vector<8x256xf32>
    %42 = arith.maximumf %40, %41 : vector<8x256xf32>
    %43 = arith.truncf %42 : vector<8x256xf32> to vector<8x256xbf16>
    %c3_i32_21 = arith.constant 3 : i32
    %44 = tpu.memref_slice %arg20[%c3_i32_21] : memref<6x!tpu.dma_semaphore, #tpu.memory_space<semaphore_mem>> -> memref<1x!tpu.dma_semaphore, #tpu.memory_space<semaphore_mem>>
    %45 = tpu.memref_squeeze %44 : memref<1x!tpu.dma_semaphore, #tpu.memory_space<semaphore_mem>> -> memref<!tpu.dma_semaphore, #tpu.memory_space<semaphore_mem>>
    tpu.wait_dma2 semaphore(%45 : memref<!tpu.dma_semaphore, #tpu.memory_space<semaphore_mem>>) src(%arg10 : memref<256x128xbf16, #tpu.memory_space<any>>) dst(%arg17 : memref<256x128xbf16, #tpu.memory_space<vmem>>)
    %c0_22 = arith.constant 0 : index
    %c0_23 = arith.constant 0 : index
    %46 = vector.load %arg17[%c0_22, %c0_23] : memref<256x128xbf16, #tpu.memory_space<vmem>>, vector<256x128xbf16>
    %cst_24 = arith.constant dense<0.000000e+00> : vector<8x128xf32>
    %47 = tpu.matmul %43, %46, %cst_24 {dimension_numbers = #tpu.dot_dimension_numbers<[1], [0], [0], [1], [0, 0, 1, 1], [], []>} : vector<8x256xbf16>, vector<256x128xbf16>, vector<8x128xf32> -> vector<8x128xf32>
    %c0_25 = arith.constant 0 : index
    %c0_26 = arith.constant 0 : index
    %48 = vector.load %arg4[%c0_25, %c0_26] : memref<1x128xf32, #tpu.memory_space<vmem>>, vector<1x128xf32>
    %49 = vector.broadcast %48 : vector<1x128xf32> to vector<8x128xf32>
    %50 = arith.addf %47, %49 : vector<8x128xf32>
    %cst_27 = arith.constant 0.000000e+00 : f32
    %51 = vector.broadcast %cst_27 : f32 to vector<8x128xf32>
    %52 = arith.maximumf %50, %51 : vector<8x128xf32>
    %53 = arith.truncf %52 : vector<8x128xf32> to vector<8x128xbf16>
    %c4_i32_28 = arith.constant 4 : i32
    %54 = tpu.memref_slice %arg20[%c4_i32_28] : memref<6x!tpu.dma_semaphore, #tpu.memory_space<semaphore_mem>> -> memref<1x!tpu.dma_semaphore, #tpu.memory_space<semaphore_mem>>
    %55 = tpu.memref_squeeze %54 : memref<1x!tpu.dma_semaphore, #tpu.memory_space<semaphore_mem>> -> memref<!tpu.dma_semaphore, #tpu.memory_space<semaphore_mem>>
    tpu.wait_dma2 semaphore(%55 : memref<!tpu.dma_semaphore, #tpu.memory_space<semaphore_mem>>) src(%arg11 : memref<128x128xbf16, #tpu.memory_space<any>>) dst(%arg18 : memref<128x128xbf16, #tpu.memory_space<vmem>>)
    %c0_29 = arith.constant 0 : index
    %c0_30 = arith.constant 0 : index
    %56 = vector.load %arg18[%c0_29, %c0_30] : memref<128x128xbf16, #tpu.memory_space<vmem>>, vector<128x128xbf16>
    %cst_31 = arith.constant dense<0.000000e+00> : vector<8x128xf32>
    %57 = tpu.matmul %53, %56, %cst_31 {dimension_numbers = #tpu.dot_dimension_numbers<[1], [0], [0], [1], [0, 0, 1, 1], [], []>} : vector<8x128xbf16>, vector<128x128xbf16>, vector<8x128xf32> -> vector<8x128xf32>
    %c0_32 = arith.constant 0 : index
    %c0_33 = arith.constant 0 : index
    %58 = vector.load %arg5[%c0_32, %c0_33] : memref<1x128xf32, #tpu.memory_space<vmem>>, vector<1x128xf32>
    %59 = vector.broadcast %58 : vector<1x128xf32> to vector<8x128xf32>
    %60 = arith.addf %57, %59 : vector<8x128xf32>
    %cst_34 = arith.constant 0.000000e+00 : f32
    %61 = vector.broadcast %cst_34 : f32 to vector<8x128xf32>
    %62 = arith.maximumf %60, %61 : vector<8x128xf32>
    %63 = arith.truncf %62 : vector<8x128xf32> to vector<8x128xbf16>
    %c5_i32_35 = arith.constant 5 : i32
    %64 = tpu.memref_slice %arg20[%c5_i32_35] : memref<6x!tpu.dma_semaphore, #tpu.memory_space<semaphore_mem>> -> memref<1x!tpu.dma_semaphore, #tpu.memory_space<semaphore_mem>>
    %65 = tpu.memref_squeeze %64 : memref<1x!tpu.dma_semaphore, #tpu.memory_space<semaphore_mem>> -> memref<!tpu.dma_semaphore, #tpu.memory_space<semaphore_mem>>
    tpu.wait_dma2 semaphore(%65 : memref<!tpu.dma_semaphore, #tpu.memory_space<semaphore_mem>>) src(%arg12 : memref<128x128xbf16, #tpu.memory_space<any>>) dst(%arg19 : memref<128x128xbf16, #tpu.memory_space<vmem>>)
    %c0_36 = arith.constant 0 : index
    %c0_37 = arith.constant 0 : index
    %66 = vector.load %arg19[%c0_36, %c0_37] : memref<128x128xbf16, #tpu.memory_space<vmem>>, vector<128x128xbf16>
    %cst_38 = arith.constant dense<0.000000e+00> : vector<8x128xf32>
    %67 = tpu.matmul %63, %66, %cst_38 {dimension_numbers = #tpu.dot_dimension_numbers<[1], [0], [0], [1], [0, 0, 1, 1], [], []>} : vector<8x128xbf16>, vector<128x128xbf16>, vector<8x128xf32> -> vector<8x128xf32>
    %c0_39 = arith.constant 0 : index
    %c0_40 = arith.constant 0 : index
    %68 = vector.load %arg6[%c0_39, %c0_40] : memref<1x128xf32, #tpu.memory_space<vmem>>, vector<1x128xf32>
    %69 = vector.broadcast %68 : vector<1x128xf32> to vector<8x128xf32>
    %70 = arith.addf %67, %69 : vector<8x128xf32>
    %c0_41 = arith.constant 0 : index
    %c0_42 = arith.constant 0 : index
    %71 = vector.load %arg13[%c0_41, %c0_42] : memref<8x128xf32, #tpu.memory_space<vmem>>, vector<8x128xf32>
    tpu.vector_store %arg13[%c0_41, %c0_42], %70 {strides = array<i32>} : memref<8x128xf32, #tpu.memory_space<vmem>>, vector<8x128xf32>,
    return
  }
}

</mosaic_0001>

<bundles_post_ra>
// kernel: tpu_custom_call.1
= control target key start
LH: loop header
LB: loop body
LE: loop exit
PB: predicated region body
PF: predicated region fallthrough
CT: control target
= control target key end

     0   :  { %18 = vsyncpa [#allocation10], 0  ;;  %s2123_s0 = inlined_call_operand.hbm [shape: f32[8,128], index: 0, kind: input, shape index: {}]   ;;  %s2124_s1 = inlined_call_operand.hbm [shape: f32[1,1024], index: 1, kind: input, shape index: {}]   ;;  %s2125_s2 = inlined_call_operand.vmem [shape: f32[1,512], index: 2, kind: input, shape index: {}]   ;;  %s2126_s3 = inlined_call_operand.vmem [shape: f32[1,256], index: 3, kind: input, shape index: {}]   ;;  %s2127_s4 = inlined_call_operand.vmem [shape: f32[1,128], index: 4, kind: input, shape index: {}]   ;;  %s2128_s5 = inlined_call_operand.vmem [shape: f32[1,128], index: 5, kind: input, shape index: {}]   ;;  %s2129_s6 = inlined_call_operand.vmem [shape: f32[1,128], index: 6, kind: input, shape index: {}]   ;;  %s2130_s7 = inlined_call_operand.hbm [shape: bf16[128,1024], index: 7, kind: input, shape index: {}]   ;;  %s2131_s8 = inlined_call_operand.hbm [shape: bf16[1024,512], index: 8, kind: input, shape index: {}]   ;;  %s2132_s9 = inlined_call_operand.hbm [shape: bf16[512,256], index: 9, kind: input, shape index: {}]   ;;  %s2133_s10 = inlined_call_operand.hbm [shape: bf16[256,128], index: 10, kind: input, shape index: {}]   ;;  %s2134_s11 = inlined_call_operand.hbm [shape: bf16[128,128], index: 11, kind: input, shape index: {}]   ;;  %s2135_s12 = inlined_call_operand.hbm [shape: bf16[128,128], index: 12, kind: input, shape index: {}]   ;;  %s2136_s13 = inlined_call_operand.hbm [shape: f32[8,128], index: 13, kind: output, shape index: {}]  }
   0x1   :  { %19 = vsyncpa [#allocation13], 0 }
   0x2   :  { %20 = vsyncpa [#allocation11], 0  ;;  %s1824_s25 = smov [#allocation9]   ;;  %s1825_s27 = smov [#allocation12]  }
   0x3   :  { %s27_s26 = sshll.u32 %s1824_s25, 4  ;;  %s37_s28 = sshll.u32 %s1825_s27, 4  ;;  %s28_s26 = int_to_ptr.vmem [resolvable:$true] %s27_s26  ;;  %s38_s28 = int_to_ptr.vmem [resolvable:$true] %s37_s28 }
   0x4   :  { %s1674_s14 = scalar_lea.hbm %s2123_s0, 128 }
   0x5   :  { %p1675_p0 = scmp.ne.s32.totalorder %s2123_s0, %s1674_s14  ;;  %p1678_p1 = scmp.lt.u32.totalorder %s1674_s14, %s2123_s0 }
   0x7   :  { %p1680_p2 = pnand %p1678_p1, %p1675_p0 }
   0x9   :  { %1683 = shalt.err (!%p1680_p2)
}
   0xa   :  { %s1684_s19 = scalar_lea.vmem %s28_s26, 128  ;;  %p1689_p4 = scmp.lt.s32.totalorder %s28_s26, %s28_s26 }
   0xb   :  { %p1685_p3 = scmp.ne.s32.totalorder %s28_s26, %s1684_s19  ;;  %p1690_p5 = scmp.lt.s32.totalorder %s1684_s19, %s1684_s19 }
   0xd   :  { %p1691_p6 = por %p1690_p5, %p1689_p4 }
   0xf   :  { %p1692_p7 = pnand %p1691_p6, %p1685_p3 }
  0x11   :  { %1695 = shalt.err (!%p1692_p7)
}
  0x12   :  { %30 = dma.hbm_to_vmem [thread:$0]  %s2123_s0, 128, %s28_s26, [#allocation10]  }
  0x13   :  { %s1696_s24 = scalar_lea.hbm %s2124_s1, 128 }
  0x14   :  { %p1697_p8 = scmp.ne.s32.totalorder %s2124_s1, %s1696_s24  ;;  %p1700_p9 = scmp.lt.u32.totalorder %s1696_s24, %s2124_s1 }
  0x16   :  { %p1702_p10 = pnand %p1700_p9, %p1697_p8 }
  0x18   :  { %1705 = shalt.err (!%p1702_p10)
}
  0x19   :  { %s1706_s14 = scalar_lea.vmem %s38_s28, 128  ;;  %p1711_p12 = scmp.lt.s32.totalorder %s38_s28, %s38_s28 }
  0x1a   :  { %p1707_p11 = scmp.ne.s32.totalorder %s38_s28, %s1706_s14  ;;  %p1712_p13 = scmp.lt.s32.totalorder %s1706_s14, %s1706_s14 }
  0x1c   :  { %p1713_p0 = por %p1712_p13, %p1711_p12 }
  0x1e   :  { %p1714_p1 = pnand %p1713_p0, %p1707_p11 }
  0x20   :  { %1717 = shalt.err (!%p1714_p1)
}
  0x21   :  { %40 = dma.hbm_to_vmem [thread:$0]  %s2124_s1, 128, %s38_s28, [#allocation13]  }
  0x22   :  { %1806 = dma.done.wait [#allocation10], 128  }
  0x23   :  { %1807 = vsyncadd [#allocation10], 4294967168 }
  0x24   :  { %1808 = dma.done.wait [#allocation13], 128  }
  0x25   :  { %1809 = vsyncadd [#allocation13], 4294967168  ;;  %s62_s15 = sld [smem:[#allocation0]]   ;;  %s1826_s16 = smov 1024  }
  0x26   :  { %74 = sst [smem:[#allocation16]] %s1826_s16  ;;  %s1827_s17 = smov 8  }
  0x27   :  { %76 = sst [smem:[#allocation16 + $0x1]] %s1826_s16  ;;  %s1828_s18 = smov 64  }
  0x28   :  { %78 = sst [smem:[#allocation16 + $0x2]] %s1827_s17  ;;  %s1829_s19 = smov [#allocation2]  }
  0x29   :  { %80 = sst [smem:[#allocation16 + $0x3]] %s1828_s18  ;;  %s70_s20 = sshll.u32 %s1829_s19, 4  ;;  %s71_s20 = int_to_ptr.vmem [resolvable:$true] %s70_s20 }
  0x2a   :  { %88 = sst [smem:[#allocation16 + $0x7]] %s1828_s18  ;;  %s1830_s1 = smov 128  }
  0x2b   :  { %s1519_s21 = sshll.u32 %s62_s15, 26  ;;  %82 = sst [smem:[#allocation16 + $0x4]] %s1830_s1 }
  0x2c   :  { %s1947_s28 = sadd.s32 134217728, %s1519_s21  ;;  %s1831_s22 = smov 2  }
  0x2d   :  { %84 = sst [smem:[#allocation16 + $0x5]] %s1831_s22  ;;  %s1832_s23 = smov 512  }
  0x2e   :  { %86 = sst [smem:[#allocation16 + $0x6]] %s1832_s23  ;;  %s1833_s24 = smov 4  }
  0x2f   :  { %90 = sst [smem:[#allocation16 + $0x8]] %s1833_s24  ;;  %s1834_s25 = smov [#allocation8]  }
  0x30   :  { %s1835_s27 = smov [#allocation15]   ;;  %s1836_s14 = smov [#allocation3]  }
  0x31   :  { %92 = dma.general %s2130_s7, 8192, %s71_s20, %s1834_s25, %s1835_s27, [#allocation16], %s1947_s28, 0  }
  0x32   :  { %109 = sst [smem:[#allocation18]] %s1832_s23  ;;  %s105_s0 = sshll.u32 %s1836_s14, 4  ;;  %s106_s0 = int_to_ptr.vmem [resolvable:$true] %s105_s0 }
  0x33   :  { %111 = sst [smem:[#allocation18 + $0x1]] %s1832_s23  ;;  %s1837_s26 = smov 256  }
  0x34   :  { %113 = sst [smem:[#allocation18 + $0x2]] %s1833_s24  ;;  %s1838_s15 = smov [#allocation4]  }
  0x35   :  { %115 = sst [smem:[#allocation18 + $0x3]] %s1828_s18  ;;  %s140_s7 = sshll.u32 %s1838_s15, 4  ;;  %s141_s7 = int_to_ptr.vmem [resolvable:$true] %s140_s7 }
  0x36   :  { %117 = sst [smem:[#allocation18 + $0x4]] %s1830_s1  ;;  %s1839_s16 = smov [#allocation8 + $0x1]  }
  0x37   :  { %119 = sst [smem:[#allocation18 + $0x5]] %s1831_s22  ;;  %s1840_s17 = smov [#allocation17]  }
  0x38   :  { %121 = sst [smem:[#allocation18 + $0x6]] %s1837_s26  ;;  %s1841_s21 = smov [#allocation5]  }
  0x39   :  { %123 = sst [smem:[#allocation18 + $0x7]] %s1828_s18  ;;  %s171_s23 = sshll.u32 %s1841_s21, 4  ;;  %s172_s23 = int_to_ptr.vmem [resolvable:$true] %s171_s23 }
  0x3a   :  { %125 = sst [smem:[#allocation18 + $0x8]] %s1833_s24  ;;  %s1842_s25 = smov [#allocation6]  }
  0x3b   :  { %127 = dma.general %s2131_s8, 32768, %s106_s0, %s1839_s16, %s1840_s17, [#allocation18], %s1947_s28, 0  }
  0x3c   :  { %144 = sst [smem:[#allocation20]] %s1837_s26  ;;  %s183_s27 = sshll.u32 %s1842_s25, 4  ;;  %s1971_s27 = int_to_ptr.vmem [resolvable:$true] %s183_s27 }
  0x3d   :  { %146 = sst [smem:[#allocation20 + $0x1]] %s1837_s26  ;;  %s1843_s8 = smov [#allocation8 + $0x2]  }
  0x3e   :  { %148 = sst [smem:[#allocation20 + $0x2]] %s1831_s22  ;;  %s1844_s29 = smov [#allocation19]  }
  0x3f   :  { %150 = sst [smem:[#allocation20 + $0x3]] %s1828_s18 }
  0x40   :  { %152 = sst [smem:[#allocation20 + $0x4]] %s1830_s1 }
  0x41   :  { %154 = sst [smem:[#allocation20 + $0x5]] %s1831_s22  ;;  %s1718_s22 = scalar_lea.hbm %s2133_s10, 2048 }
  0x42   :  { %156 = sst [smem:[#allocation20 + $0x6]] %s1830_s1  ;;  %p1719_p2 = scmp.ne.s32.totalorder %s2133_s10, %s1718_s22 }
  0x43   :  { %158 = sst [smem:[#allocation20 + $0x7]] %s1828_s18  ;;  %p1722_p3 = scmp.lt.u32.totalorder %s1718_s22, %s2133_s10 }
  0x44   :  { %160 = sst [smem:[#allocation20 + $0x8]] %s1833_s24 }
  0x45   :  { %162 = dma.general %s2132_s9, 8192, %s141_s7, %s1843_s8, %s1844_s29, [#allocation20], %s1947_s28, 0  }
  0x46   :  { %p1724_p4 = pnand %p1722_p3, %p1719_p2 }
  0x48   :  { %1727 = shalt.err (!%p1724_p4)  }
  0x49   :  { %s1728_s24 = scalar_lea.vmem %s172_s23, 2048  ;;  %p1733_p6 = scmp.lt.s32.totalorder %s172_s23, %s172_s23 }
  0x4a   :  { %p1729_p5 = scmp.ne.s32.totalorder %s172_s23, %s1728_s24  ;;  %p1734_p7 = scmp.lt.s32.totalorder %s1728_s24, %s1728_s24 }
  0x4c   :  { %p1735_p8 = por %p1734_p7, %p1733_p6 }
  0x4e   :  { %p1736_p9 = pnand %p1735_p8, %p1729_p5 }
  0x50   :  { %1739 = shalt.err (!%p1736_p9)  }
  0x51   :  { %174 = dma.hbm_to_vmem [thread:$0]  %s2133_s10, 2048, %s172_s23, [#allocation8 + $0x3] }
  0x52   :  { %s1740_s19 = scalar_lea.hbm %s2134_s11, 1024 }
  0x53   :  { %p1741_p10 = scmp.ne.s32.totalorder %s2134_s11, %s1740_s19  ;;  %p1744_p11 = scmp.lt.u32.totalorder %s1740_s19, %s2134_s11 }
  0x55   :  { %p1746_p12 = pnand %p1744_p11, %p1741_p10 }
  0x57   :  { %1749 = shalt.err (!%p1746_p12)  }
  0x58   :  { %s1750_s29 = scalar_lea.vmem %s1971_s27, 1024  ;;  %p1755_p0 = scmp.lt.s32.totalorder %s1971_s27, %s1971_s27 }
  0x59   :  { %p1751_p13 = scmp.ne.s32.totalorder %s1971_s27, %s1750_s29  ;;  %p1756_p1 = scmp.lt.s32.totalorder %s1750_s29, %s1750_s29 }
  0x5b   :  { %p1757_p2 = por %p1756_p1, %p1755_p0 }
  0x5d   :  { %p1758_p3 = pnand %p1757_p2, %p1751_p13 }
  0x5f   :  { %1761 = shalt.err (!%p1758_p3)  }
  0x60   :  { %186 = dma.hbm_to_vmem [thread:$0]  %s2134_s11, 1024, %s1971_s27, [#allocation8 + $0x4] }
  0x61   :  { %s1845_s30 = smov [#allocation7]   ;;  %s1762_s22 = scalar_lea.hbm %s2135_s12, 1024 }
  0x62   :  { %s195_s14 = sshll.u32 %s1845_s30, 4  ;;  %p1763_p4 = scmp.ne.s32.totalorder %s2135_s12, %s1762_s22  ;;  %s196_s14 = int_to_ptr.vmem [resolvable:$true] %s195_s14 }
  0x63   :  { %p1766_p5 = scmp.lt.u32.totalorder %s1762_s22, %s2135_s12 }
  0x65   :  { %p1768_p6 = pnand %p1766_p5, %p1763_p4 }
  0x67   :  { %1771 = shalt.err (!%p1768_p6)  }
  0x68   :  { %s1772_s24 = scalar_lea.vmem %s196_s14, 1024  ;;  %p1777_p8 = scmp.lt.s32.totalorder %s196_s14, %s196_s14 }
  0x69   :  { %p1773_p7 = scmp.ne.s32.totalorder %s196_s14, %s1772_s24  ;;  %p1778_p9 = scmp.lt.s32.totalorder %s1772_s24, %s1772_s24 }
  0x6b   :  { %p1779_p10 = por %p1778_p9, %p1777_p8 }
  0x6d   :  { %p1780_p11 = pnand %p1779_p10, %p1773_p7 }
  0x6f   :  { %1783 = shalt.err (!%p1780_p11)  }
  0x70   :  { %198 = dma.hbm_to_vmem [thread:$0]  %s2135_s12, 1024, %s196_s14, [#allocation8 + $0x5]  ;;  %v199_v0 = vld [vmem:[#allocation9] sm:$0xff] }
  0x71   :  { %v2019_v1 = vpack.c.bf16 %v199_v0, %v199_v0 }
  0x72   :  { %1810 = dma.done.wait [#allocation8], 8192 }
  0x73   :  { %1811 = vsyncadd [#allocation8], 4294959104  ;;  %v1846_v2 = vmov 0   ;;  %v206_v3 = vld [vmem:[#allocation2 + $0x8] sm:$0xff]  ;;  %v208_v4 = vld [vmem:[#allocation2 + $0x18] sm:$0xff] }
  0x74   :  { %343 = vmatprep.mubr.bf16.mxu0 %v1846_v2  ;;  %384 = vmatprep.mubr.bf16.mxu1 %v1846_v2  ;;  %v205_v5 = vld [vmem:[#allocation2] sm:$0xff]  ;;  %v207_v6 = vld [vmem:[#allocation2 + $0x10] sm:$0xff]  ;;  %v214_v7 = vld [vmem:[#allocation2 + $0x48] sm:$0xff] }
  0x75   :  { %311 = vmatprep.subr.bf16.mxu0 %v206_v3  ;;  %352 = vmatprep.subr.bf16.mxu1 %v208_v4  ;;  %v216_v8 = vld [vmem:[#allocation2 + $0x58] sm:$0xff]  ;;  %v213_v9 = vld [vmem:[#allocation2 + $0x40] sm:$0xff]  ;;  %v215_v10 = vld [vmem:[#allocation2 + $0x50] sm:$0xff]  ;;  %v271_v4 = vlaneseq }
  0x76   :  { %312 = vmatpush1.bf16.msra.mxu0 %v205_v5  ;;  %353 = vmatpush1.bf16.msra.mxu1 %v207_v6  ;;  %v222_v11 = vld [vmem:[#allocation2 + $0x88] sm:$0xff]  ;;  %v224_v12 = vld [vmem:[#allocation2 + $0x98] sm:$0xff]  ;;  %v221_v13 = vld [vmem:[#allocation2 + $0x80] sm:$0xff] }
  0x77   :  { %313 = vmatprep.subr.bf16.mxu0 %v214_v7  ;;  %354 = vmatprep.subr.bf16.mxu1 %v216_v8  ;;  %v223_v14 = vld [vmem:[#allocation2 + $0x90] sm:$0xff]  ;;  %v230_v15 = vld [vmem:[#allocation2 + $0xc8] sm:$0xff]  ;;  %v232_v16 = vld [vmem:[#allocation2 + $0xd8] sm:$0xff]  ;;  %v2029_v5 = vshrl.u32 %v271_v4, 7 }
  0x78   :  { %v229_v17 = vld [vmem:[#allocation2 + $0xc0] sm:$0xff]  ;;  %v231_v18 = vld [vmem:[#allocation2 + $0xd0] sm:$0xff]  ;;  %v238_v19 = vld [vmem:[#allocation2 + $0x108] sm:$0xff] }
  0x79   :  { %v240_v20 = vld [vmem:[#allocation2 + $0x118] sm:$0xff]  ;;  %v237_v21 = vld [vmem:[#allocation2 + $0x100] sm:$0xff]  ;;  %v239_v22 = vld [vmem:[#allocation2 + $0x110] sm:$0xff]  ;;  %v2032_v6 = vsub.s32 0, %v2029_v5  ;;  %v281_v7 = vsub.s32 2, %v2029_v5 }
  0x7a   :  { %314 = vmatpush1.bf16.msra.mxu0 %v213_v9  ;;  %355 = vmatpush1.bf16.msra.mxu1 %v215_v10  ;;  %v246_v23 = vld [vmem:[#allocation2 + $0x148] sm:$0xff]  ;;  %v248_v24 = vld [vmem:[#allocation2 + $0x158] sm:$0xff]  ;;  %v245_v25 = vld [vmem:[#allocation2 + $0x140] sm:$0xff]  ;;  %v2036_v9 = vsub.s32 1, %v2029_v5  ;;  %v285_v10 = vsub.s32 3, %v2029_v5 }
  0x7b   :  { %315 = vmatprep.subr.bf16.mxu0 %v222_v11  ;;  %356 = vmatprep.subr.bf16.mxu1 %v224_v12  ;;  %v247_v26 = vld [vmem:[#allocation2 + $0x150] sm:$0xff]  ;;  %v254_v27 = vld [vmem:[#allocation2 + $0x188] sm:$0xff]  ;;  %v256_v28 = vld [vmem:[#allocation2 + $0x198] sm:$0xff] }
  0x7c   :  { %v253_v29 = vld [vmem:[#allocation2 + $0x180] sm:$0xff]  ;;  %v255_v30 = vld [vmem:[#allocation2 + $0x190] sm:$0xff]  ;;  %v262_v31 = vld [vmem:[#allocation2 + $0x1c8] sm:$0xff] }
  0x7d   :  { %v264_v32 = vld [vmem:[#allocation2 + $0x1d8] sm:$0xff]  ;;  %v261_v33 = vld [vmem:[#allocation2 + $0x1c0] sm:$0xff]  ;;  %v263_v34 = vld [vmem:[#allocation2 + $0x1d0] sm:$0xff] }
  0x7e   :  { %316 = vmatpush1.bf16.msra.mxu0 %v221_v13  ;;  %357 = vmatpush1.bf16.msra.mxu1 %v223_v14  ;;  %v210_v35 = vld [vmem:[#allocation2 + $0x28] sm:$0xff]  ;;  %v212_v36 = vld [vmem:[#allocation2 + $0x38] sm:$0xff]  ;;  %v209_v37 = vld [vmem:[#allocation2 + $0x20] sm:$0xff] }
  0x7f   :  { %317 = vmatprep.subr.bf16.mxu0 %v230_v15  ;;  %358 = vmatprep.subr.bf16.mxu1 %v232_v16  ;;  %v211_v38 = vld [vmem:[#allocation2 + $0x30] sm:$0xff]  ;;  %v218_v39 = vld [vmem:[#allocation2 + $0x68] sm:$0xff]  ;;  %v220_v40 = vld [vmem:[#allocation2 + $0x78] sm:$0xff] }
  0x80   :  { %v217_v41 = vld [vmem:[#allocation2 + $0x60] sm:$0xff]  ;;  %v219_v42 = vld [vmem:[#allocation2 + $0x70] sm:$0xff]  ;;  %v226_v43 = vld [vmem:[#allocation2 + $0xa8] sm:$0xff] }
  0x81   :  { %v228_v44 = vld [vmem:[#allocation2 + $0xb8] sm:$0xff]  ;;  %v225_v45 = vld [vmem:[#allocation2 + $0xa0] sm:$0xff]  ;;  %v227_v46 = vld [vmem:[#allocation2 + $0xb0] sm:$0xff] }
  0x82   :  { %318 = vmatpush1.bf16.msra.mxu0 %v229_v17  ;;  %359 = vmatpush1.bf16.msra.mxu1 %v231_v18  ;;  %v234_v47 = vld [vmem:[#allocation2 + $0xe8] sm:$0xff]  ;;  %v236_v48 = vld [vmem:[#allocation2 + $0xf8] sm:$0xff]  ;;  %v233_v49 = vld [vmem:[#allocation2 + $0xe0] sm:$0xff] }
  0x83   :  { %319 = vmatprep.subr.bf16.mxu0 %v238_v19  ;;  %360 = vmatprep.subr.bf16.mxu1 %v240_v20  ;;  %v235_v50 = vld [vmem:[#allocation2 + $0xf0] sm:$0xff]  ;;  %v242_v51 = vld [vmem:[#allocation2 + $0x128] sm:$0xff]  ;;  %v244_v52 = vld [vmem:[#allocation2 + $0x138] sm:$0xff] }
  0x84   :  { %v241_v53 = vld [vmem:[#allocation2 + $0x120] sm:$0xff]  ;;  %v243_v54 = vld [vmem:[#allocation2 + $0x130] sm:$0xff]  ;;  %v250_v55 = vld [vmem:[#allocation2 + $0x168] sm:$0xff] }
  0x85   :  { %v252_v56 = vld [vmem:[#allocation2 + $0x178] sm:$0xff]  ;;  %v249_v57 = vld [vmem:[#allocation2 + $0x160] sm:$0xff]  ;;  %v251_v58 = vld [vmem:[#allocation2 + $0x170] sm:$0xff] }
  0x86   :  { %320 = vmatpush1.bf16.msra.mxu0 %v237_v21  ;;  %361 = vmatpush1.bf16.msra.mxu1 %v239_v22  ;;  %v258_v59 = vld [vmem:[#allocation2 + $0x1a8] sm:$0xff]  ;;  %v260_v60 = vld [vmem:[#allocation2 + $0x1b8] sm:$0xff]  ;;  %v257_v61 = vld [vmem:[#allocation2 + $0x1a0] sm:$0xff] }
  0x87   :  { %321 = vmatprep.subr.bf16.mxu0 %v246_v23  ;;  %362 = vmatprep.subr.bf16.mxu1 %v248_v24  ;;  %v259_v62 = vld [vmem:[#allocation2 + $0x1b0] sm:$0xff]  ;;  %v266_v63 = vld [vmem:[#allocation2 + $0x1e8] sm:$0xff]  ;;  %v268_v0 = vld [vmem:[#allocation2 + $0x1f8] sm:$0xff] }
  0x88   :  { %v267_v3 = vld [vmem:[#allocation2 + $0x1f0] sm:$0xff]  ;;  %v269_v8 = vld [vmem:[#allocation12] sm:$0xff] }
  0x89   :  { %v274_v11 = vrot.slane %v269_v8, %v2032_v6  ;;  %v282_v12 = vrot.slane %v269_v8, %v281_v7  ;;  %v286_v13 = vrot.slane %v269_v8, %v285_v10 }
  0x8a   :  { %322 = vmatpush1.bf16.msra.mxu0 %v245_v25  ;;  %363 = vmatpush1.bf16.msra.mxu1 %v247_v26 }
  0x8b   :  { %323 = vmatprep.subr.bf16.mxu0 %v254_v27  ;;  %364 = vmatprep.subr.bf16.mxu1 %v256_v28 }
  0x8e   :  { %324 = vmatpush1.bf16.msra.mxu0 %v253_v29  ;;  %365 = vmatpush1.bf16.msra.mxu1 %v255_v30 }
  0x8f   :  { %325 = vmatprep.subr.bf16.mxu0 %v262_v31  ;;  %366 = vmatprep.subr.bf16.mxu1 %v264_v32 }
  0x92   :  { %326 = vmatpush1.bf16.msra.mxu0 %v261_v33  ;;  %367 = vmatpush1.bf16.msra.mxu1 %v263_v34  ;;  %v289_v34 = vsub.s32 4, %v2029_v5 }
  0x93   :  { %393 = vmatprep.subr.bf16.mxu0 %v210_v35  ;;  %434 = vmatprep.subr.bf16.mxu1 %v212_v36  ;;  %v297_v35 = vsub.s32 6, %v2029_v5  ;;  %v293_v36 = vsub.s32 5, %v2029_v5 }
  0x95   :  { %344 = vmatmul.mubr.bf16.vlgmr.msra.gmra.mrb[0].mxu0 %v2019_v1  ;;  %385 = vmatmul.mubr.bf16.vlgmr.msra.gmra.mrb[0].mxu1 %v2019_v1 }
  0x96   :  { %394 = vmatpush1.bf16.msra.mxu0 %v209_v37  ;;  %435 = vmatpush1.bf16.msra.mxu1 %v211_v38  ;;  %v301_v37 = vsub.s32 7, %v2029_v5  ;;  %v290_v38 = vrot.slane %v269_v8, %v289_v34 }
  0x97   :  { %395 = vmatprep.subr.bf16.mxu0 %v218_v39  ;;  %436 = vmatprep.subr.bf16.mxu1 %v220_v40  ;;  %v298_v39 = vrot.slane %v269_v8, %v297_v35  ;;  %v294_v40 = vrot.slane %v269_v8, %v293_v36 }
  0x98   :  { %425 = vmatprep.mubr.bf16.mxu0 %v1846_v2  ;;  %466 = vmatprep.mubr.bf16.mxu1 %v1846_v2  ;;  %v265_v2 = vld [vmem:[#allocation2 + $0x1e0] sm:$0xff] }
  0x9a   :  { %396 = vmatpush1.bf16.msra.mxu0 %v217_v41  ;;  %437 = vmatpush1.bf16.msra.mxu1 %v219_v42  ;;  %v302_v41 = vrot.slane %v269_v8, %v301_v37 }
  0x9b   :  { %397 = vmatprep.subr.bf16.mxu0 %v226_v43  ;;  %438 = vmatprep.subr.bf16.mxu1 %v228_v44 }
  0x9e   :  { %398 = vmatpush1.bf16.msra.mxu0 %v225_v45  ;;  %439 = vmatpush1.bf16.msra.mxu1 %v227_v46 }
  0x9f   :  { %399 = vmatprep.subr.bf16.mxu0 %v234_v47  ;;  %440 = vmatprep.subr.bf16.mxu1 %v236_v48 }
  0xa2   :  { %400 = vmatpush1.bf16.msra.mxu0 %v233_v49  ;;  %441 = vmatpush1.bf16.msra.mxu1 %v235_v50 }
  0xa3   :  { %401 = vmatprep.subr.bf16.mxu0 %v242_v51  ;;  %442 = vmatprep.subr.bf16.mxu1 %v244_v52 }
  0xa6   :  { %402 = vmatpush1.bf16.msra.mxu0 %v241_v53  ;;  %443 = vmatpush1.bf16.msra.mxu1 %v243_v54 }
  0xa7   :  { %403 = vmatprep.subr.bf16.mxu0 %v250_v55  ;;  %444 = vmatprep.subr.bf16.mxu1 %v252_v56 }
  0xaa   :  { %404 = vmatpush1.bf16.msra.mxu0 %v249_v57  ;;  %445 = vmatpush1.bf16.msra.mxu1 %v251_v58 }
  0xab   :  { %405 = vmatprep.subr.bf16.mxu0 %v258_v59  ;;  %446 = vmatprep.subr.bf16.mxu1 %v260_v60 }
  0xae   :  { %406 = vmatpush1.bf16.msra.mxu0 %v257_v61  ;;  %447 = vmatpush1.bf16.msra.mxu1 %v259_v62 }
  0xaf   :  { %407 = vmatprep.subr.bf16.mxu0 %v266_v63  ;;  %448 = vmatprep.subr.bf16.mxu1 %v268_v0 }
  0xb2   :  { %408 = vmatpush1.bf16.msra.mxu0 %v265_v2  ;;  %449 = vmatpush1.bf16.msra.mxu1 %v267_v3 }
  0xb5   :  { %426 = vmatmul.mubr.bf16.vlgmr.msra.gmra.mrb[4].mxu0 %v2019_v1  ;;  %467 = vmatmul.mubr.bf16.vlgmr.msra.gmra.mrb[4].mxu1 %v2019_v1  ;;  %v278_v1 = vrot.slane %v269_v8, %v2036_v9 }
 0x168   :  { %v345_v14 = vpop.f32.mrb[0].mxu0  ;;  %v386_v15 = vpop.f32.mrb[0].mxu1 }
 0x169   :  { %v346_v16 = vadd.f32 %v345_v14, %v274_v11  ;;  %v387_v17 = vadd.f32 %v386_v15, %v282_v12  ;;  %v347_v18 = vpop.f32.mrb[1].mxu0  ;;  %v388_v19 = vpop.f32.mrb[1].mxu1 }
 0x16a   :  { %v348_v20 = vadd.f32 %v347_v18, %v278_v1  ;;  %v389_v21 = vadd.f32 %v388_v19, %v286_v13  ;;  %v349_v22 = vpop.f32.mrb[2].mxu0  ;;  %v390_v23 = vpop.f32.mrb[2].mxu1 }
 0x16b   :  { %v475_v24 = vmax.f32 %v346_v16, 0.0  ;;  %v477_v25 = vmax.f32 %v387_v17, 0.0  ;;  %v350_v26 = vpop.f32.mrb[3].mxu0  ;;  %v391_v27 = vpop.f32.mrb[3].mxu1 }
 0x16c   :  { %v476_v28 = vmax.f32 %v348_v20, 0.0  ;;  %v478_v29 = vmax.f32 %v389_v21, 0.0 }
 0x16d   :  { %v2045_v30 = vpack.c.bf16 %v475_v24, %v475_v24  ;;  %v2047_v31 = vpack.c.bf16 %v477_v25, %v477_v25 }
 0x16e   :  { %v484_v32 = vpack.c.bf16 %v476_v28, %v476_v28  ;;  %v2049_v33 = vpack.c.bf16 %v478_v29, %v478_v29 }
 0x188   :  { %v427_v42 = vpop.f32.mrb[4].mxu0  ;;  %v468_v43 = vpop.f32.mrb[4].mxu1 }
 0x189   :  { %v428_v44 = vadd.f32 %v427_v42, %v290_v38  ;;  %v469_v45 = vadd.f32 %v468_v43, %v298_v39  ;;  %v429_v46 = vpop.f32.mrb[5].mxu0  ;;  %v470_v47 = vpop.f32.mrb[5].mxu1 }
 0x18a   :  { %v430_v48 = vadd.f32 %v429_v46, %v294_v40  ;;  %v471_v49 = vadd.f32 %v470_v47, %v302_v41  ;;  %v431_v50 = vpop.f32.mrb[6].mxu0  ;;  %v472_v51 = vpop.f32.mrb[6].mxu1 }
 0x18b   :  { %v479_v52 = vmax.f32 %v428_v44, 0.0  ;;  %v481_v53 = vmax.f32 %v469_v45, 0.0  ;;  %v432_v54 = vpop.f32.mrb[7].mxu0  ;;  %v473_v55 = vpop.f32.mrb[7].mxu1 }
 0x18c   :  { %v480_v56 = vmax.f32 %v430_v48, 0.0  ;;  %v482_v57 = vmax.f32 %v471_v49, 0.0 }
 0x18d   :  { %v2055_v58 = vpack.c.bf16 %v479_v52, %v479_v52  ;;  %v2057_v59 = vpack.c.bf16 %v481_v53, %v481_v53 }
 0x18e   :  { %v2059_v60 = vpack.c.bf16 %v480_v56, %v480_v56  ;;  %v2061_v61 = vpack.c.bf16 %v482_v57, %v482_v57 }
 0x18f   :  { %1812 = dma.done.wait [#allocation8 + $0x1], 32768 }
 0x190   :  { %1813 = vsyncadd [#allocation8 + $0x1], 4294934528  ;;  %805 = vmatprep.mubr.bf16.mxu0 %v484_v32  ;;  %969 = vmatprep.mubr.bf16.mxu1 %v484_v32  ;;  %v496_v62 = vld [vmem:[#allocation3 + $0x8] sm:$0xff]  ;;  %v498_v63 = vld [vmem:[#allocation3 + $0x18] sm:$0xff] }
 0x191   :  { %v495_v0 = vld [vmem:[#allocation3] sm:$0xff]  ;;  %773 = vmatprep.subr.bf16.mxu0 %v496_v62  ;;  %937 = vmatprep.subr.bf16.mxu1 %v498_v63  ;;  %v497_v2 = vld [vmem:[#allocation3 + $0x10] sm:$0xff]  ;;  %v500_v3 = vld [vmem:[#allocation3 + $0x28] sm:$0xff] }
 0x192   :  { %v502_v4 = vld [vmem:[#allocation3 + $0x38] sm:$0xff]  ;;  %774 = vmatpush1.bf16.msra.mxu0 %v495_v0  ;;  %938 = vmatpush1.bf16.msra.mxu1 %v497_v2  ;;  %v499_v8 = vld [vmem:[#allocation3 + $0x20] sm:$0xff]  ;;  %v501_v11 = vld [vmem:[#allocation3 + $0x30] sm:$0xff] }
 0x193   :  { %775 = vmatprep.subr.bf16.mxu0 %v500_v3  ;;  %939 = vmatprep.subr.bf16.mxu1 %v502_v4  ;;  %v504_v12 = vld [vmem:[#allocation3 + $0x48] sm:$0xff]  ;;  %v506_v1 = vld [vmem:[#allocation3 + $0x58] sm:$0xff]  ;;  %v503_v13 = vld [vmem:[#allocation3 + $0x40] sm:$0xff] }
 0x194   :  { %v505_v14 = vld [vmem:[#allocation3 + $0x50] sm:$0xff]  ;;  %v508_v15 = vld [vmem:[#allocation3 + $0x68] sm:$0xff]  ;;  %v510_v16 = vld [vmem:[#allocation3 + $0x78] sm:$0xff] }
 0x195   :  { %v507_v17 = vld [vmem:[#allocation3 + $0x60] sm:$0xff]  ;;  %v509_v18 = vld [vmem:[#allocation3 + $0x70] sm:$0xff]  ;;  %v512_v19 = vld [vmem:[#allocation3 + $0x88] sm:$0xff] }
 0x196   :  { %776 = vmatpush1.bf16.msra.mxu0 %v499_v8  ;;  %940 = vmatpush1.bf16.msra.mxu1 %v501_v11  ;;  %v514_v20 = vld [vmem:[#allocation3 + $0x98] sm:$0xff]  ;;  %v511_v21 = vld [vmem:[#allocation3 + $0x80] sm:$0xff]  ;;  %v513_v22 = vld [vmem:[#allocation3 + $0x90] sm:$0xff] }
 0x197   :  { %777 = vmatprep.subr.bf16.mxu0 %v504_v12  ;;  %941 = vmatprep.subr.bf16.mxu1 %v506_v1  ;;  %v516_v23 = vld [vmem:[#allocation3 + $0xa8] sm:$0xff]  ;;  %v518_v24 = vld [vmem:[#allocation3 + $0xb8] sm:$0xff]  ;;  %v515_v25 = vld [vmem:[#allocation3 + $0xa0] sm:$0xff] }
 0x198   :  { %v517_v26 = vld [vmem:[#allocation3 + $0xb0] sm:$0xff]  ;;  %v520_v27 = vld [vmem:[#allocation3 + $0xc8] sm:$0xff]  ;;  %v522_v28 = vld [vmem:[#allocation3 + $0xd8] sm:$0xff] }
 0x199   :  { %v519_v29 = vld [vmem:[#allocation3 + $0xc0] sm:$0xff]  ;;  %v521_v32 = vld [vmem:[#allocation3 + $0xd0] sm:$0xff]  ;;  %v524_v34 = vld [vmem:[#allocation3 + $0xe8] sm:$0xff] }
 0x19a   :  { %778 = vmatpush1.bf16.msra.mxu0 %v503_v13  ;;  %942 = vmatpush1.bf16.msra.mxu1 %v505_v14  ;;  %v526_v35 = vld [vmem:[#allocation3 + $0xf8] sm:$0xff]  ;;  %v523_v36 = vld [vmem:[#allocation3 + $0xe0] sm:$0xff]  ;;  %v525_v37 = vld [vmem:[#allocation3 + $0xf0] sm:$0xff] }
 0x19b   :  { %779 = vmatprep.subr.bf16.mxu0 %v508_v15  ;;  %943 = vmatprep.subr.bf16.mxu1 %v510_v16  ;;  %v528_v38 = vld [vmem:[#allocation3 + $0x108] sm:$0xff]  ;;  %v530_v39 = vld [vmem:[#allocation3 + $0x118] sm:$0xff]  ;;  %v527_v40 = vld [vmem:[#allocation3 + $0x100] sm:$0xff] }
 0x19c   :  { %v529_v41 = vld [vmem:[#allocation3 + $0x110] sm:$0xff]  ;;  %v532_v42 = vld [vmem:[#allocation3 + $0x128] sm:$0xff]  ;;  %v534_v43 = vld [vmem:[#allocation3 + $0x138] sm:$0xff] }
 0x19d   :  { %v531_v44 = vld [vmem:[#allocation3 + $0x120] sm:$0xff]  ;;  %v533_v45 = vld [vmem:[#allocation3 + $0x130] sm:$0xff]  ;;  %v536_v46 = vld [vmem:[#allocation3 + $0x148] sm:$0xff] }
 0x19e   :  { %780 = vmatpush1.bf16.msra.mxu0 %v507_v17  ;;  %944 = vmatpush1.bf16.msra.mxu1 %v509_v18  ;;  %v538_v47 = vld [vmem:[#allocation3 + $0x158] sm:$0xff]  ;;  %v535_v48 = vld [vmem:[#allocation3 + $0x140] sm:$0xff]  ;;  %v537_v49 = vld [vmem:[#allocation3 + $0x150] sm:$0xff] }
 0x19f   :  { %781 = vmatprep.subr.bf16.mxu0 %v512_v19  ;;  %945 = vmatprep.subr.bf16.mxu1 %v514_v20  ;;  %v540_v50 = vld [vmem:[#allocation3 + $0x168] sm:$0xff]  ;;  %v542_v51 = vld [vmem:[#allocation3 + $0x178] sm:$0xff]  ;;  %v539_v52 = vld [vmem:[#allocation3 + $0x160] sm:$0xff] }
 0x1a0   :  { %v541_v53 = vld [vmem:[#allocation3 + $0x170] sm:$0xff]  ;;  %v544_v54 = vld [vmem:[#allocation3 + $0x188] sm:$0xff]  ;;  %v546_v55 = vld [vmem:[#allocation3 + $0x198] sm:$0xff] }
 0x1a1   :  { %v543_v56 = vld [vmem:[#allocation3 + $0x180] sm:$0xff]  ;;  %v545_v57 = vld [vmem:[#allocation3 + $0x190] sm:$0xff]  ;;  %v548_v62 = vld [vmem:[#allocation3 + $0x1a8] sm:$0xff] }
 0x1a2   :  { %782 = vmatpush1.bf16.msra.mxu0 %v511_v21  ;;  %946 = vmatpush1.bf16.msra.mxu1 %v513_v22  ;;  %v550_v63 = vld [vmem:[#allocation3 + $0x1b8] sm:$0xff]  ;;  %v547_v0 = vld [vmem:[#allocation3 + $0x1a0] sm:$0xff]  ;;  %v549_v2 = vld [vmem:[#allocation3 + $0x1b0] sm:$0xff] }
 0x1a3   :  { %783 = vmatprep.subr.bf16.mxu0 %v516_v23  ;;  %947 = vmatprep.subr.bf16.mxu1 %v518_v24  ;;  %v552_v3 = vld [vmem:[#allocation3 + $0x1c8] sm:$0xff]  ;;  %v554_v4 = vld [vmem:[#allocation3 + $0x1d8] sm:$0xff]  ;;  %v551_v8 = vld [vmem:[#allocation3 + $0x1c0] sm:$0xff] }
 0x1a4   :  { %v553_v11 = vld [vmem:[#allocation3 + $0x1d0] sm:$0xff]  ;;  %v556_v12 = vld [vmem:[#allocation3 + $0x1e8] sm:$0xff]  ;;  %v558_v1 = vld [vmem:[#allocation3 + $0x1f8] sm:$0xff] }
 0x1a5   :  { %v555_v13 = vld [vmem:[#allocation3 + $0x1e0] sm:$0xff]  ;;  %v557_v14 = vld [vmem:[#allocation3 + $0x1f0] sm:$0xff]  ;;  %v560_v15 = vld [vmem:[#allocation3 + $0x208] sm:$0xff] }
 0x1a6   :  { %784 = vmatpush1.bf16.msra.mxu0 %v515_v25  ;;  %948 = vmatpush1.bf16.msra.mxu1 %v517_v26  ;;  %v562_v16 = vld [vmem:[#allocation3 + $0x218] sm:$0xff]  ;;  %v559_v17 = vld [vmem:[#allocation3 + $0x200] sm:$0xff]  ;;  %v561_v18 = vld [vmem:[#allocation3 + $0x210] sm:$0xff] }
 0x1a7   :  { %785 = vmatprep.subr.bf16.mxu0 %v520_v27  ;;  %949 = vmatprep.subr.bf16.mxu1 %v522_v28  ;;  %v564_v19 = vld [vmem:[#allocation3 + $0x228] sm:$0xff]  ;;  %v566_v20 = vld [vmem:[#allocation3 + $0x238] sm:$0xff]  ;;  %v563_v21 = vld [vmem:[#allocation3 + $0x220] sm:$0xff] }
 0x1a8   :  { %v565_v22 = vld [vmem:[#allocation3 + $0x230] sm:$0xff]  ;;  %v568_v23 = vld [vmem:[#allocation3 + $0x248] sm:$0xff]  ;;  %v570_v24 = vld [vmem:[#allocation3 + $0x258] sm:$0xff] }
 0x1a9   :  { %v567_v25 = vld [vmem:[#allocation3 + $0x240] sm:$0xff]  ;;  %v569_v26 = vld [vmem:[#allocation3 + $0x250] sm:$0xff]  ;;  %v572_v27 = vld [vmem:[#allocation3 + $0x268] sm:$0xff] }
 0x1aa   :  { %786 = vmatpush1.bf16.msra.mxu0 %v519_v29  ;;  %950 = vmatpush1.bf16.msra.mxu1 %v521_v32  ;;  %v571_v28 = vld [vmem:[#allocation3 + $0x260] sm:$0xff]  ;;  %v573_v29 = vld [vmem:[#allocation3 + $0x270] sm:$0xff]  ;;  %v576_v32 = vld [vmem:[#allocation3 + $0x288] sm:$0xff] }
 0x1ab   :  { %787 = vmatprep.subr.bf16.mxu0 %v524_v34  ;;  %951 = vmatprep.subr.bf16.mxu1 %v526_v35  ;;  %v578_v34 = vld [vmem:[#allocation3 + $0x298] sm:$0xff]  ;;  %v577_v35 = vld [vmem:[#allocation3 + $0x290] sm:$0xff] }
 0x1ae   :  { %788 = vmatpush1.bf16.msra.mxu0 %v523_v36  ;;  %952 = vmatpush1.bf16.msra.mxu1 %v525_v37  ;;  %v580_v36 = vld [vmem:[#allocation3 + $0x2a8] sm:$0xff]  ;;  %v582_v37 = vld [vmem:[#allocation3 + $0x2b8] sm:$0xff] }
 0x1af   :  { %789 = vmatprep.subr.bf16.mxu0 %v528_v38  ;;  %953 = vmatprep.subr.bf16.mxu1 %v530_v39  ;;  %v579_v38 = vld [vmem:[#allocation3 + $0x2a0] sm:$0xff]  ;;  %v581_v39 = vld [vmem:[#allocation3 + $0x2b0] sm:$0xff] }
 0x1b2   :  { %790 = vmatpush1.bf16.msra.mxu0 %v527_v40  ;;  %954 = vmatpush1.bf16.msra.mxu1 %v529_v41  ;;  %v584_v40 = vld [vmem:[#allocation3 + $0x2c8] sm:$0xff]  ;;  %v586_v41 = vld [vmem:[#allocation3 + $0x2d8] sm:$0xff] }
 0x1b3   :  { %791 = vmatprep.subr.bf16.mxu0 %v532_v42  ;;  %955 = vmatprep.subr.bf16.mxu1 %v534_v43  ;;  %v583_v42 = vld [vmem:[#allocation3 + $0x2c0] sm:$0xff]  ;;  %v585_v43 = vld [vmem:[#allocation3 + $0x2d0] sm:$0xff] }
 0x1b6   :  { %792 = vmatpush1.bf16.msra.mxu0 %v531_v44  ;;  %956 = vmatpush1.bf16.msra.mxu1 %v533_v45  ;;  %v588_v44 = vld [vmem:[#allocation3 + $0x2e8] sm:$0xff]  ;;  %v590_v45 = vld [vmem:[#allocation3 + $0x2f8] sm:$0xff] }
 0x1b7   :  { %793 = vmatprep.subr.bf16.mxu0 %v536_v46  ;;  %957 = vmatprep.subr.bf16.mxu1 %v538_v47  ;;  %v587_v46 = vld [vmem:[#allocation3 + $0x2e0] sm:$0xff]  ;;  %v589_v47 = vld [vmem:[#allocation3 + $0x2f0] sm:$0xff] }
 0x1ba   :  { %794 = vmatpush1.bf16.msra.mxu0 %v535_v48  ;;  %958 = vmatpush1.bf16.msra.mxu1 %v537_v49  ;;  %v592_v48 = vld [vmem:[#allocation3 + $0x308] sm:$0xff]  ;;  %v594_v49 = vld [vmem:[#allocation3 + $0x318] sm:$0xff] }
 0x1bb   :  { %795 = vmatprep.subr.bf16.mxu0 %v540_v50  ;;  %959 = vmatprep.subr.bf16.mxu1 %v542_v51  ;;  %v591_v50 = vld [vmem:[#allocation3 + $0x300] sm:$0xff]  ;;  %v593_v51 = vld [vmem:[#allocation3 + $0x310] sm:$0xff] }
 0x1be   :  { %796 = vmatpush1.bf16.msra.mxu0 %v539_v52  ;;  %960 = vmatpush1.bf16.msra.mxu1 %v541_v53  ;;  %v596_v52 = vld [vmem:[#allocation3 + $0x328] sm:$0xff]  ;;  %v598_v53 = vld [vmem:[#allocation3 + $0x338] sm:$0xff] }
 0x1bf   :  { %797 = vmatprep.subr.bf16.mxu0 %v544_v54  ;;  %961 = vmatprep.subr.bf16.mxu1 %v546_v55  ;;  %v595_v54 = vld [vmem:[#allocation3 + $0x320] sm:$0xff]  ;;  %v597_v55 = vld [vmem:[#allocation3 + $0x330] sm:$0xff] }
 0x1c2   :  { %798 = vmatpush1.bf16.msra.mxu0 %v543_v56  ;;  %962 = vmatpush1.bf16.msra.mxu1 %v545_v57  ;;  %v600_v56 = vld [vmem:[#allocation3 + $0x348] sm:$0xff]  ;;  %v602_v57 = vld [vmem:[#allocation3 + $0x358] sm:$0xff] }
 0x1c3   :  { %799 = vmatprep.subr.bf16.mxu0 %v548_v62  ;;  %963 = vmatprep.subr.bf16.mxu1 %v550_v63  ;;  %v599_v62 = vld [vmem:[#allocation3 + $0x340] sm:$0xff]  ;;  %v601_v63 = vld [vmem:[#allocation3 + $0x350] sm:$0xff] }
 0x1c6   :  { %800 = vmatpush1.bf16.msra.mxu0 %v547_v0  ;;  %964 = vmatpush1.bf16.msra.mxu1 %v549_v2  ;;  %v604_v0 = vld [vmem:[#allocation3 + $0x368] sm:$0xff]  ;;  %v606_v2 = vld [vmem:[#allocation3 + $0x378] sm:$0xff] }
 0x1c7   :  { %801 = vmatprep.subr.bf16.mxu0 %v552_v3  ;;  %965 = vmatprep.subr.bf16.mxu1 %v554_v4  ;;  %v603_v3 = vld [vmem:[#allocation3 + $0x360] sm:$0xff]  ;;  %v605_v4 = vld [vmem:[#allocation3 + $0x370] sm:$0xff] }
 0x1ca   :  { %802 = vmatpush1.bf16.msra.mxu0 %v551_v8  ;;  %966 = vmatpush1.bf16.msra.mxu1 %v553_v11  ;;  %v608_v8 = vld [vmem:[#allocation3 + $0x388] sm:$0xff]  ;;  %v610_v11 = vld [vmem:[#allocation3 + $0x398] sm:$0xff] }
 0x1cb   :  { %803 = vmatprep.subr.bf16.mxu0 %v556_v12  ;;  %967 = vmatprep.subr.bf16.mxu1 %v558_v1  ;;  %v607_v12 = vld [vmem:[#allocation3 + $0x380] sm:$0xff]  ;;  %v609_v1 = vld [vmem:[#allocation3 + $0x390] sm:$0xff] }
 0x1ce   :  { %804 = vmatpush1.bf16.msra.mxu0 %v555_v13  ;;  %968 = vmatpush1.bf16.msra.mxu1 %v557_v14  ;;  %v612_v13 = vld [vmem:[#allocation3 + $0x3a8] sm:$0xff]  ;;  %v614_v14 = vld [vmem:[#allocation3 + $0x3b8] sm:$0xff] }
 0x1cf   :  { %814 = vmatprep.subr.bf16.mxu0 %v560_v15  ;;  %978 = vmatprep.subr.bf16.mxu1 %v562_v16  ;;  %v611_v15 = vld [vmem:[#allocation3 + $0x3a0] sm:$0xff]  ;;  %v613_v16 = vld [vmem:[#allocation3 + $0x3b0] sm:$0xff] }
 0x1d1   :  { %806 = vmatmul.mubr.bf16.vlgmr.msra.gmra.mrb[8].mxu0 %v2045_v30  ;;  %970 = vmatmul.mubr.bf16.vlgmr.msra.gmra.mrb[8].mxu1 %v2045_v30  ;;  %v574_v30 = vld [vmem:[#allocation3 + $0x278] sm:$0xff] }
 0x1d2   :  { %815 = vmatpush1.bf16.msra.mxu0 %v559_v17  ;;  %979 = vmatpush1.bf16.msra.mxu1 %v561_v18  ;;  %v616_v17 = vld [vmem:[#allocation3 + $0x3c8] sm:$0xff]  ;;  %v618_v18 = vld [vmem:[#allocation3 + $0x3d8] sm:$0xff] }
 0x1d3   :  { %816 = vmatprep.subr.bf16.mxu0 %v564_v19  ;;  %980 = vmatprep.subr.bf16.mxu1 %v566_v20  ;;  %v615_v19 = vld [vmem:[#allocation3 + $0x3c0] sm:$0xff]  ;;  %v617_v20 = vld [vmem:[#allocation3 + $0x3d0] sm:$0xff] }
 0x1d4   :  { %846 = vmatprep.mubr.bf16.mxu0 %v2049_v33  ;;  %1010 = vmatprep.mubr.bf16.mxu1 %v2049_v33  ;;  %v575_v33 = vld [vmem:[#allocation3 + $0x280] sm:$0xff] }
 0x1d6   :  { %817 = vmatpush1.bf16.msra.mxu0 %v563_v21  ;;  %981 = vmatpush1.bf16.msra.mxu1 %v565_v22  ;;  %v620_v21 = vld [vmem:[#allocation3 + $0x3e8] sm:$0xff]  ;;  %v622_v22 = vld [vmem:[#allocation3 + $0x3f8] sm:$0xff] }
 0x1d7   :  { %818 = vmatprep.subr.bf16.mxu0 %v568_v23  ;;  %982 = vmatprep.subr.bf16.mxu1 %v570_v24  ;;  %v619_v23 = vld [vmem:[#allocation3 + $0x3e0] sm:$0xff]  ;;  %v621_v24 = vld [vmem:[#allocation3 + $0x3f0] sm:$0xff] }
 0x1da   :  { %819 = vmatpush1.bf16.msra.mxu0 %v567_v25  ;;  %983 = vmatpush1.bf16.msra.mxu1 %v569_v26  ;;  %v624_v25 = vld [vmem:[#allocation3 + $0x408] sm:$0xff]  ;;  %v626_v26 = vld [vmem:[#allocation3 + $0x418] sm:$0xff] }
 0x1db   :  { %820 = vmatprep.subr.bf16.mxu0 %v572_v27  ;;  %984 = vmatprep.subr.bf16.mxu1 %v574_v30  ;;  %v623_v27 = vld [vmem:[#allocation3 + $0x400] sm:$0xff]  ;;  %v625_v30 = vld [vmem:[#allocation3 + $0x410] sm:$0xff] }
 0x1de   :  { %821 = vmatpush1.bf16.msra.mxu0 %v571_v28  ;;  %985 = vmatpush1.bf16.msra.mxu1 %v573_v29  ;;  %v628_v28 = vld [vmem:[#allocation3 + $0x428] sm:$0xff]  ;;  %v630_v29 = vld [vmem:[#allocation3 + $0x438] sm:$0xff] }
 0x1df   :  { %822 = vmatprep.subr.bf16.mxu0 %v576_v32  ;;  %986 = vmatprep.subr.bf16.mxu1 %v578_v34  ;;  %v627_v32 = vld [vmem:[#allocation3 + $0x420] sm:$0xff]  ;;  %v629_v34 = vld [vmem:[#allocation3 + $0x430] sm:$0xff] }
 0x1e2   :  { %823 = vmatpush1.bf16.msra.mxu0 %v575_v33  ;;  %987 = vmatpush1.bf16.msra.mxu1 %v577_v35  ;;  %v632_v33 = vld [vmem:[#allocation3 + $0x448] sm:$0xff]  ;;  %v634_v35 = vld [vmem:[#allocation3 + $0x458] sm:$0xff] }
 0x1e3   :  { %824 = vmatprep.subr.bf16.mxu0 %v580_v36  ;;  %988 = vmatprep.subr.bf16.mxu1 %v582_v37  ;;  %v631_v36 = vld [vmem:[#allocation3 + $0x440] sm:$0xff]  ;;  %v633_v37 = vld [vmem:[#allocation3 + $0x450] sm:$0xff] }
 0x1e6   :  { %825 = vmatpush1.bf16.msra.mxu0 %v579_v38  ;;  %989 = vmatpush1.bf16.msra.mxu1 %v581_v39  ;;  %v636_v38 = vld [vmem:[#allocation3 + $0x468] sm:$0xff]  ;;  %v635_v39 = vld [vmem:[#allocation3 + $0x460] sm:$0xff] }
 0x1e7   :  { %826 = vmatprep.subr.bf16.mxu0 %v584_v40  ;;  %990 = vmatprep.subr.bf16.mxu1 %v586_v41  ;;  %v637_v40 = vld [vmem:[#allocation3 + $0x470] sm:$0xff]  ;;  %v640_v41 = vld [vmem:[#allocation3 + $0x488] sm:$0xff] }
 0x1ea   :  { %827 = vmatpush1.bf16.msra.mxu0 %v583_v42  ;;  %991 = vmatpush1.bf16.msra.mxu1 %v585_v43  ;;  %v642_v42 = vld [vmem:[#allocation3 + $0x498] sm:$0xff]  ;;  %v641_v43 = vld [vmem:[#allocation3 + $0x490] sm:$0xff] }
 0x1eb   :  { %828 = vmatprep.subr.bf16.mxu0 %v588_v44  ;;  %992 = vmatprep.subr.bf16.mxu1 %v590_v45  ;;  %v644_v44 = vld [vmem:[#allocation3 + $0x4a8] sm:$0xff]  ;;  %v646_v45 = vld [vmem:[#allocation3 + $0x4b8] sm:$0xff] }
 0x1ee   :  { %829 = vmatpush1.bf16.msra.mxu0 %v587_v46  ;;  %993 = vmatpush1.bf16.msra.mxu1 %v589_v47  ;;  %v643_v46 = vld [vmem:[#allocation3 + $0x4a0] sm:$0xff]  ;;  %v645_v47 = vld [vmem:[#allocation3 + $0x4b0] sm:$0xff] }
 0x1ef   :  { %830 = vmatprep.subr.bf16.mxu0 %v592_v48  ;;  %994 = vmatprep.subr.bf16.mxu1 %v594_v49  ;;  %v648_v48 = vld [vmem:[#allocation3 + $0x4c8] sm:$0xff]  ;;  %v650_v49 = vld [vmem:[#allocation3 + $0x4d8] sm:$0xff] }
 0x1f2   :  { %831 = vmatpush1.bf16.msra.mxu0 %v591_v50  ;;  %995 = vmatpush1.bf16.msra.mxu1 %v593_v51  ;;  %v647_v50 = vld [vmem:[#allocation3 + $0x4c0] sm:$0xff]  ;;  %v649_v51 = vld [vmem:[#allocation3 + $0x4d0] sm:$0xff] }
 0x1f3   :  { %832 = vmatprep.subr.bf16.mxu0 %v596_v52  ;;  %996 = vmatprep.subr.bf16.mxu1 %v598_v53  ;;  %v652_v52 = vld [vmem:[#allocation3 + $0x4e8] sm:$0xff]  ;;  %v654_v53 = vld [vmem:[#allocation3 + $0x4f8] sm:$0xff] }
 0x1f6   :  { %833 = vmatpush1.bf16.msra.mxu0 %v595_v54  ;;  %997 = vmatpush1.bf16.msra.mxu1 %v597_v55  ;;  %v651_v54 = vld [vmem:[#allocation3 + $0x4e0] sm:$0xff]  ;;  %v653_v55 = vld [vmem:[#allocation3 + $0x4f0] sm:$0xff] }
 0x1f7   :  { %834 = vmatprep.subr.bf16.mxu0 %v600_v56  ;;  %998 = vmatprep.subr.bf16.mxu1 %v602_v57  ;;  %v656_v56 = vld [vmem:[#allocation3 + $0x508] sm:$0xff]  ;;  %v658_v57 = vld [vmem:[#allocation3 + $0x518] sm:$0xff] }
 0x1fa   :  { %835 = vmatpush1.bf16.msra.mxu0 %v599_v62  ;;  %999 = vmatpush1.bf16.msra.mxu1 %v601_v63  ;;  %v655_v62 = vld [vmem:[#allocation3 + $0x500] sm:$0xff]  ;;  %v657_v63 = vld [vmem:[#allocation3 + $0x510] sm:$0xff] }
 0x1fb   :  { %836 = vmatprep.subr.bf16.mxu0 %v604_v0  ;;  %1000 = vmatprep.subr.bf16.mxu1 %v606_v2  ;;  %v660_v0 = vld [vmem:[#allocation3 + $0x528] sm:$0xff]  ;;  %v662_v2 = vld [vmem:[#allocation3 + $0x538] sm:$0xff] }
 0x1fe   :  { %837 = vmatpush1.bf16.msra.mxu0 %v603_v3  ;;  %1001 = vmatpush1.bf16.msra.mxu1 %v605_v4  ;;  %v659_v3 = vld [vmem:[#allocation3 + $0x520] sm:$0xff]  ;;  %v661_v4 = vld [vmem:[#allocation3 + $0x530] sm:$0xff] }
 0x1ff   :  { %838 = vmatprep.subr.bf16.mxu0 %v608_v8  ;;  %1002 = vmatprep.subr.bf16.mxu1 %v610_v11  ;;  %v664_v8 = vld [vmem:[#allocation3 + $0x548] sm:$0xff]  ;;  %v666_v11 = vld [vmem:[#allocation3 + $0x558] sm:$0xff] }
 0x202   :  { %839 = vmatpush1.bf16.msra.mxu0 %v607_v12  ;;  %1003 = vmatpush1.bf16.msra.mxu1 %v609_v1  ;;  %v663_v12 = vld [vmem:[#allocation3 + $0x540] sm:$0xff]  ;;  %v665_v1 = vld [vmem:[#allocation3 + $0x550] sm:$0xff] }
 0x203   :  { %840 = vmatprep.subr.bf16.mxu0 %v612_v13  ;;  %1004 = vmatprep.subr.bf16.mxu1 %v614_v14  ;;  %v668_v13 = vld [vmem:[#allocation3 + $0x568] sm:$0xff]  ;;  %v670_v14 = vld [vmem:[#allocation3 + $0x578] sm:$0xff] }
 0x206   :  { %841 = vmatpush1.bf16.msra.mxu0 %v611_v15  ;;  %1005 = vmatpush1.bf16.msra.mxu1 %v613_v16  ;;  %v667_v15 = vld [vmem:[#allocation3 + $0x560] sm:$0xff]  ;;  %v669_v16 = vld [vmem:[#allocation3 + $0x570] sm:$0xff] }
 0x207   :  { %842 = vmatprep.subr.bf16.mxu0 %v616_v17  ;;  %1006 = vmatprep.subr.bf16.mxu1 %v618_v18  ;;  %v672_v17 = vld [vmem:[#allocation3 + $0x588] sm:$0xff]  ;;  %v674_v18 = vld [vmem:[#allocation3 + $0x598] sm:$0xff] }
 0x20a   :  { %843 = vmatpush1.bf16.msra.mxu0 %v615_v19  ;;  %1007 = vmatpush1.bf16.msra.mxu1 %v617_v20  ;;  %v671_v19 = vld [vmem:[#allocation3 + $0x580] sm:$0xff]  ;;  %v673_v20 = vld [vmem:[#allocation3 + $0x590] sm:$0xff] }
 0x20b   :  { %844 = vmatprep.subr.bf16.mxu0 %v620_v21  ;;  %1008 = vmatprep.subr.bf16.mxu1 %v622_v22  ;;  %v676_v21 = vld [vmem:[#allocation3 + $0x5a8] sm:$0xff]  ;;  %v678_v22 = vld [vmem:[#allocation3 + $0x5b8] sm:$0xff] }
 0x20e   :  { %845 = vmatpush1.bf16.msra.mxu0 %v619_v23  ;;  %1009 = vmatpush1.bf16.msra.mxu1 %v621_v24  ;;  %v675_v23 = vld [vmem:[#allocation3 + $0x5a0] sm:$0xff]  ;;  %v677_v24 = vld [vmem:[#allocation3 + $0x5b0] sm:$0xff] }
 0x20f   :  { %855 = vmatprep.subr.bf16.mxu0 %v624_v25  ;;  %1019 = vmatprep.subr.bf16.mxu1 %v626_v26  ;;  %v680_v25 = vld [vmem:[#allocation3 + $0x5c8] sm:$0xff]  ;;  %v682_v26 = vld [vmem:[#allocation3 + $0x5d8] sm:$0xff] }
 0x211   :  { %847 = vmatmul.mubr.bf16.vlgmr.msra.gmra.mrb[8].mxu0 %v2047_v31  ;;  %1011 = vmatmul.mubr.bf16.vlgmr.msra.gmra.mrb[8].mxu1 %v2047_v31  ;;  %v638_v31 = vld [vmem:[#allocation3 + $0x478] sm:$0xff] }
 0x212   :  { %856 = vmatpush1.bf16.msra.mxu0 %v623_v27  ;;  %1020 = vmatpush1.bf16.msra.mxu1 %v625_v30  ;;  %v679_v27 = vld [vmem:[#allocation3 + $0x5c0] sm:$0xff]  ;;  %v681_v30 = vld [vmem:[#allocation3 + $0x5d0] sm:$0xff] }
 0x213   :  { %857 = vmatprep.subr.bf16.mxu0 %v628_v28  ;;  %1021 = vmatprep.subr.bf16.mxu1 %v630_v29  ;;  %v684_v28 = vld [vmem:[#allocation3 + $0x5e8] sm:$0xff]  ;;  %v686_v29 = vld [vmem:[#allocation3 + $0x5f8] sm:$0xff] }
 0x214   :  { %887 = vmatprep.mubr.bf16.mxu0 %v2059_v60  ;;  %1051 = vmatprep.mubr.bf16.mxu1 %v2059_v60  ;;  %v639_v60 = vld [vmem:[#allocation3 + $0x480] sm:$0xff] }
 0x216   :  { %858 = vmatpush1.bf16.msra.mxu0 %v627_v32  ;;  %1022 = vmatpush1.bf16.msra.mxu1 %v629_v34  ;;  %v683_v32 = vld [vmem:[#allocation3 + $0x5e0] sm:$0xff]  ;;  %v685_v34 = vld [vmem:[#allocation3 + $0x5f0] sm:$0xff] }
 0x217   :  { %859 = vmatprep.subr.bf16.mxu0 %v632_v33  ;;  %1023 = vmatprep.subr.bf16.mxu1 %v634_v35  ;;  %v688_v33 = vld [vmem:[#allocation3 + $0x608] sm:$0xff]  ;;  %v690_v35 = vld [vmem:[#allocation3 + $0x618] sm:$0xff] }
 0x21a   :  { %860 = vmatpush1.bf16.msra.mxu0 %v631_v36  ;;  %1024 = vmatpush1.bf16.msra.mxu1 %v633_v37  ;;  %v687_v36 = vld [vmem:[#allocation3 + $0x600] sm:$0xff]  ;;  %v689_v37 = vld [vmem:[#allocation3 + $0x610] sm:$0xff] }
 0x21b   :  { %861 = vmatprep.subr.bf16.mxu0 %v636_v38  ;;  %1025 = vmatprep.subr.bf16.mxu1 %v638_v31  ;;  %v692_v38 = vld [vmem:[#allocation3 + $0x628] sm:$0xff]  ;;  %v694_v31 = vld [vmem:[#allocation3 + $0x638] sm:$0xff] }
 0x21e   :  { %862 = vmatpush1.bf16.msra.mxu0 %v635_v39  ;;  %1026 = vmatpush1.bf16.msra.mxu1 %v637_v40  ;;  %v691_v39 = vld [vmem:[#allocation3 + $0x620] sm:$0xff]  ;;  %v693_v40 = vld [vmem:[#allocation3 + $0x630] sm:$0xff] }
 0x21f   :  { %863 = vmatprep.subr.bf16.mxu0 %v640_v41  ;;  %1027 = vmatprep.subr.bf16.mxu1 %v642_v42  ;;  %v696_v41 = vld [vmem:[#allocation3 + $0x648] sm:$0xff]  ;;  %v698_v42 = vld [vmem:[#allocation3 + $0x658] sm:$0xff] }
 0x222   :  { %864 = vmatpush1.bf16.msra.mxu0 %v639_v60  ;;  %1028 = vmatpush1.bf16.msra.mxu1 %v641_v43  ;;  %v695_v60 = vld [vmem:[#allocation3 + $0x640] sm:$0xff]  ;;  %v697_v43 = vld [vmem:[#allocation3 + $0x650] sm:$0xff] }
 0x223   :  { %865 = vmatprep.subr.bf16.mxu0 %v644_v44  ;;  %1029 = vmatprep.subr.bf16.mxu1 %v646_v45  ;;  %v700_v44 = vld [vmem:[#allocation3 + $0x668] sm:$0xff]  ;;  %v699_v45 = vld [vmem:[#allocation3 + $0x660] sm:$0xff] }
 0x226   :  { %866 = vmatpush1.bf16.msra.mxu0 %v643_v46  ;;  %1030 = vmatpush1.bf16.msra.mxu1 %v645_v47  ;;  %v701_v46 = vld [vmem:[#allocation3 + $0x670] sm:$0xff]  ;;  %v704_v47 = vld [vmem:[#allocation3 + $0x688] sm:$0xff] }
 0x227   :  { %867 = vmatprep.subr.bf16.mxu0 %v648_v48  ;;  %1031 = vmatprep.subr.bf16.mxu1 %v650_v49  ;;  %v706_v48 = vld [vmem:[#allocation3 + $0x698] sm:$0xff]  ;;  %v705_v49 = vld [vmem:[#allocation3 + $0x690] sm:$0xff] }
 0x22a   :  { %868 = vmatpush1.bf16.msra.mxu0 %v647_v50  ;;  %1032 = vmatpush1.bf16.msra.mxu1 %v649_v51  ;;  %v708_v50 = vld [vmem:[#allocation3 + $0x6a8] sm:$0xff]  ;;  %v710_v51 = vld [vmem:[#allocation3 + $0x6b8] sm:$0xff] }
 0x22b   :  { %869 = vmatprep.subr.bf16.mxu0 %v652_v52  ;;  %1033 = vmatprep.subr.bf16.mxu1 %v654_v53  ;;  %v707_v52 = vld [vmem:[#allocation3 + $0x6a0] sm:$0xff]  ;;  %v709_v53 = vld [vmem:[#allocation3 + $0x6b0] sm:$0xff] }
 0x22e   :  { %870 = vmatpush1.bf16.msra.mxu0 %v651_v54  ;;  %1034 = vmatpush1.bf16.msra.mxu1 %v653_v55  ;;  %v712_v54 = vld [vmem:[#allocation3 + $0x6c8] sm:$0xff]  ;;  %v714_v55 = vld [vmem:[#allocation3 + $0x6d8] sm:$0xff] }
 0x22f   :  { %871 = vmatprep.subr.bf16.mxu0 %v656_v56  ;;  %1035 = vmatprep.subr.bf16.mxu1 %v658_v57  ;;  %v711_v56 = vld [vmem:[#allocation3 + $0x6c0] sm:$0xff]  ;;  %v713_v57 = vld [vmem:[#allocation3 + $0x6d0] sm:$0xff] }
 0x232   :  { %872 = vmatpush1.bf16.msra.mxu0 %v655_v62  ;;  %1036 = vmatpush1.bf16.msra.mxu1 %v657_v63  ;;  %v716_v62 = vld [vmem:[#allocation3 + $0x6e8] sm:$0xff]  ;;  %v718_v63 = vld [vmem:[#allocation3 + $0x6f8] sm:$0xff] }
 0x233   :  { %873 = vmatprep.subr.bf16.mxu0 %v660_v0  ;;  %1037 = vmatprep.subr.bf16.mxu1 %v662_v2  ;;  %v715_v0 = vld [vmem:[#allocation3 + $0x6e0] sm:$0xff]  ;;  %v717_v2 = vld [vmem:[#allocation3 + $0x6f0] sm:$0xff] }
 0x236   :  { %874 = vmatpush1.bf16.msra.mxu0 %v659_v3  ;;  %1038 = vmatpush1.bf16.msra.mxu1 %v661_v4  ;;  %v720_v3 = vld [vmem:[#allocation3 + $0x708] sm:$0xff]  ;;  %v722_v4 = vld [vmem:[#allocation3 + $0x718] sm:$0xff] }
 0x237   :  { %875 = vmatprep.subr.bf16.mxu0 %v664_v8  ;;  %1039 = vmatprep.subr.bf16.mxu1 %v666_v11  ;;  %v719_v8 = vld [vmem:[#allocation3 + $0x700] sm:$0xff]  ;;  %v721_v11 = vld [vmem:[#allocation3 + $0x710] sm:$0xff] }
 0x23a   :  { %876 = vmatpush1.bf16.msra.mxu0 %v663_v12  ;;  %1040 = vmatpush1.bf16.msra.mxu1 %v665_v1  ;;  %v724_v12 = vld [vmem:[#allocation3 + $0x728] sm:$0xff]  ;;  %v726_v1 = vld [vmem:[#allocation3 + $0x738] sm:$0xff] }
 0x23b   :  { %877 = vmatprep.subr.bf16.mxu0 %v668_v13  ;;  %1041 = vmatprep.subr.bf16.mxu1 %v670_v14  ;;  %v723_v13 = vld [vmem:[#allocation3 + $0x720] sm:$0xff]  ;;  %v725_v14 = vld [vmem:[#allocation3 + $0x730] sm:$0xff] }
 0x23e   :  { %878 = vmatpush1.bf16.msra.mxu0 %v667_v15  ;;  %1042 = vmatpush1.bf16.msra.mxu1 %v669_v16  ;;  %v728_v15 = vld [vmem:[#allocation3 + $0x748] sm:$0xff]  ;;  %v730_v16 = vld [vmem:[#allocation3 + $0x758] sm:$0xff] }
 0x23f   :  { %879 = vmatprep.subr.bf16.mxu0 %v672_v17  ;;  %1043 = vmatprep.subr.bf16.mxu1 %v674_v18  ;;  %v727_v17 = vld [vmem:[#allocation3 + $0x740] sm:$0xff]  ;;  %v729_v18 = vld [vmem:[#allocation3 + $0x750] sm:$0xff] }
 0x242   :  { %880 = vmatpush1.bf16.msra.mxu0 %v671_v19  ;;  %1044 = vmatpush1.bf16.msra.mxu1 %v673_v20  ;;  %v732_v19 = vld [vmem:[#allocation3 + $0x768] sm:$0xff]  ;;  %v734_v20 = vld [vmem:[#allocation3 + $0x778] sm:$0xff] }
 0x243   :  { %881 = vmatprep.subr.bf16.mxu0 %v676_v21  ;;  %1045 = vmatprep.subr.bf16.mxu1 %v678_v22  ;;  %v731_v21 = vld [vmem:[#allocation3 + $0x760] sm:$0xff]  ;;  %v733_v22 = vld [vmem:[#allocation3 + $0x770] sm:$0xff] }
 0x246   :  { %882 = vmatpush1.bf16.msra.mxu0 %v675_v23  ;;  %1046 = vmatpush1.bf16.msra.mxu1 %v677_v24  ;;  %v736_v23 = vld [vmem:[#allocation3 + $0x788] sm:$0xff]  ;;  %v738_v24 = vld [vmem:[#allocation3 + $0x798] sm:$0xff] }
 0x247   :  { %883 = vmatprep.subr.bf16.mxu0 %v680_v25  ;;  %1047 = vmatprep.subr.bf16.mxu1 %v682_v26  ;;  %v735_v25 = vld [vmem:[#allocation3 + $0x780] sm:$0xff]  ;;  %v737_v26 = vld [vmem:[#allocation3 + $0x790] sm:$0xff] }
 0x24a   :  { %884 = vmatpush1.bf16.msra.mxu0 %v679_v27  ;;  %1048 = vmatpush1.bf16.msra.mxu1 %v681_v30  ;;  %v740_v27 = vld [vmem:[#allocation3 + $0x7a8] sm:$0xff]  ;;  %v742_v30 = vld [vmem:[#allocation3 + $0x7b8] sm:$0xff] }
 0x24b   :  { %885 = vmatprep.subr.bf16.mxu0 %v684_v28  ;;  %1049 = vmatprep.subr.bf16.mxu1 %v686_v29  ;;  %v739_v28 = vld [vmem:[#allocation3 + $0x7a0] sm:$0xff]  ;;  %v741_v29 = vld [vmem:[#allocation3 + $0x7b0] sm:$0xff] }
 0x24e   :  { %886 = vmatpush1.bf16.msra.mxu0 %v683_v32  ;;  %1050 = vmatpush1.bf16.msra.mxu1 %v685_v34  ;;  %v744_v32 = vld [vmem:[#allocation3 + $0x7c8] sm:$0xff]  ;;  %v746_v34 = vld [vmem:[#allocation3 + $0x7d8] sm:$0xff] }
 0x24f   :  { %896 = vmatprep.subr.bf16.mxu0 %v688_v33  ;;  %1060 = vmatprep.subr.bf16.mxu1 %v690_v35  ;;  %v743_v33 = vld [vmem:[#allocation3 + $0x7c0] sm:$0xff]  ;;  %v745_v35 = vld [vmem:[#allocation3 + $0x7d0] sm:$0xff] }
 0x251   :  { %888 = vmatmul.mubr.bf16.vlgmr.msra.gmra.mrb[8].mxu0 %v2055_v58  ;;  %1052 = vmatmul.mubr.bf16.vlgmr.msra.gmra.mrb[8].mxu1 %v2055_v58  ;;  %v702_v58 = vld [vmem:[#allocation3 + $0x678] sm:$0xff] }
 0x252   :  { %897 = vmatpush1.bf16.msra.mxu0 %v687_v36  ;;  %1061 = vmatpush1.bf16.msra.mxu1 %v689_v37  ;;  %v748_v36 = vld [vmem:[#allocation3 + $0x7e8] sm:$0xff]  ;;  %v750_v37 = vld [vmem:[#allocation3 + $0x7f8] sm:$0xff] }
 0x253   :  { %898 = vmatprep.subr.bf16.mxu0 %v692_v38  ;;  %1062 = vmatprep.subr.bf16.mxu1 %v694_v31  ;;  %v747_v38 = vld [vmem:[#allocation3 + $0x7e0] sm:$0xff]  ;;  %v749_v31 = vld [vmem:[#allocation3 + $0x7f0] sm:$0xff] }
 0x254   :  { %928 = vmatprep.mubr.bf16.mxu0 %v2061_v61  ;;  %1092 = vmatprep.mubr.bf16.mxu1 %v2061_v61  ;;  %v703_v61 = vld [vmem:[#allocation3 + $0x680] sm:$0xff] }
 0x256   :  { %899 = vmatpush1.bf16.msra.mxu0 %v691_v39  ;;  %1063 = vmatpush1.bf16.msra.mxu1 %v693_v40  ;;  %v751_v39 = vld [vmem:[%s2125_s2] sm:$0xf] }
 0x257   :  { %900 = vmatprep.subr.bf16.mxu0 %v696_v41  ;;  %1064 = vmatprep.subr.bf16.mxu1 %v698_v42  ;;  %v756_v40 = vrot.slane %v751_v39, %v2032_v6  ;;  %v764_v41 = vrot.slane %v751_v39, %v281_v7  ;;  %v760_v42 = vrot.slane %v751_v39, %v2036_v9 }
 0x25a   :  { %901 = vmatpush1.bf16.msra.mxu0 %v695_v60  ;;  %1065 = vmatpush1.bf16.msra.mxu1 %v697_v43  ;;  %v768_v60 = vrot.slane %v751_v39, %v285_v10 }
 0x25b   :  { %902 = vmatprep.subr.bf16.mxu0 %v700_v44  ;;  %1066 = vmatprep.subr.bf16.mxu1 %v702_v58 }
 0x25e   :  { %903 = vmatpush1.bf16.msra.mxu0 %v699_v45  ;;  %1067 = vmatpush1.bf16.msra.mxu1 %v701_v46 }
 0x25f   :  { %904 = vmatprep.subr.bf16.mxu0 %v704_v47  ;;  %1068 = vmatprep.subr.bf16.mxu1 %v706_v48 }
 0x262   :  { %905 = vmatpush1.bf16.msra.mxu0 %v703_v61  ;;  %1069 = vmatpush1.bf16.msra.mxu1 %v705_v49 }
 0x263   :  { %906 = vmatprep.subr.bf16.mxu0 %v708_v50  ;;  %1070 = vmatprep.subr.bf16.mxu1 %v710_v51 }
 0x266   :  { %907 = vmatpush1.bf16.msra.mxu0 %v707_v52  ;;  %1071 = vmatpush1.bf16.msra.mxu1 %v709_v53 }
 0x267   :  { %908 = vmatprep.subr.bf16.mxu0 %v712_v54  ;;  %1072 = vmatprep.subr.bf16.mxu1 %v714_v55 }
 0x26a   :  { %909 = vmatpush1.bf16.msra.mxu0 %v711_v56  ;;  %1073 = vmatpush1.bf16.msra.mxu1 %v713_v57 }
 0x26b   :  { %910 = vmatprep.subr.bf16.mxu0 %v716_v62  ;;  %1074 = vmatprep.subr.bf16.mxu1 %v718_v63 }
 0x26e   :  { %911 = vmatpush1.bf16.msra.mxu0 %v715_v0  ;;  %1075 = vmatpush1.bf16.msra.mxu1 %v717_v2 }
 0x26f   :  { %912 = vmatprep.subr.bf16.mxu0 %v720_v3  ;;  %1076 = vmatprep.subr.bf16.mxu1 %v722_v4 }
 0x272   :  { %913 = vmatpush1.bf16.msra.mxu0 %v719_v8  ;;  %1077 = vmatpush1.bf16.msra.mxu1 %v721_v11 }
 0x273   :  { %914 = vmatprep.subr.bf16.mxu0 %v724_v12  ;;  %1078 = vmatprep.subr.bf16.mxu1 %v726_v1 }
 0x276   :  { %915 = vmatpush1.bf16.msra.mxu0 %v723_v13  ;;  %1079 = vmatpush1.bf16.msra.mxu1 %v725_v14 }
 0x277   :  { %916 = vmatprep.subr.bf16.mxu0 %v728_v15  ;;  %1080 = vmatprep.subr.bf16.mxu1 %v730_v16 }
 0x27a   :  { %917 = vmatpush1.bf16.msra.mxu0 %v727_v17  ;;  %1081 = vmatpush1.bf16.msra.mxu1 %v729_v18 }
 0x27b   :  { %918 = vmatprep.subr.bf16.mxu0 %v732_v19  ;;  %1082 = vmatprep.subr.bf16.mxu1 %v734_v20 }
 0x27e   :  { %919 = vmatpush1.bf16.msra.mxu0 %v731_v21  ;;  %1083 = vmatpush1.bf16.msra.mxu1 %v733_v22 }
 0x27f   :  { %920 = vmatprep.subr.bf16.mxu0 %v736_v23  ;;  %1084 = vmatprep.subr.bf16.mxu1 %v738_v24 }
 0x282   :  { %921 = vmatpush1.bf16.msra.mxu0 %v735_v25  ;;  %1085 = vmatpush1.bf16.msra.mxu1 %v737_v26 }
 0x283   :  { %922 = vmatprep.subr.bf16.mxu0 %v740_v27  ;;  %1086 = vmatprep.subr.bf16.mxu1 %v742_v30 }
 0x286   :  { %923 = vmatpush1.bf16.msra.mxu0 %v739_v28  ;;  %1087 = vmatpush1.bf16.msra.mxu1 %v741_v29 }
 0x287   :  { %924 = vmatprep.subr.bf16.mxu0 %v744_v32  ;;  %1088 = vmatprep.subr.bf16.mxu1 %v746_v34 }
 0x28a   :  { %925 = vmatpush1.bf16.msra.mxu0 %v743_v33  ;;  %1089 = vmatpush1.bf16.msra.mxu1 %v745_v35 }
 0x28b   :  { %926 = vmatprep.subr.bf16.mxu0 %v748_v36  ;;  %1090 = vmatprep.subr.bf16.mxu1 %v750_v37 }
 0x28e   :  { %927 = vmatpush1.bf16.msra.mxu0 %v747_v38  ;;  %1091 = vmatpush1.bf16.msra.mxu1 %v749_v31 }
 0x291   :  { %929 = vmatmul.mubr.bf16.vlgmr.msra.gmra.mrb[8].mxu0 %v2057_v59  ;;  %1093 = vmatmul.mubr.bf16.vlgmr.msra.gmra.mrb[8].mxu1 %v2057_v59 }
 0x364   :  { %v930_v43 = vpop.f32.mrb[8].mxu0  ;;  %v1094_v44 = vpop.f32.mrb[8].mxu1 }
 0x365   :  { %v1614_v58 = vadd.f32 %v930_v43, %v756_v40  ;;  %v1616_v45 = vadd.f32 %v1094_v44, %v764_v41  ;;  %v932_v46 = vpop.f32.mrb[9].mxu0  ;;  %v1096_v59 = vpop.f32.mrb[9].mxu1 }
 0x366   :  { %v1615_v47 = vadd.f32 %v932_v46, %v760_v42  ;;  %v1617_v48 = vadd.f32 %v1096_v59, %v768_v60  ;;  %v934_v61 = vpop.f32.mrb[10].mxu0  ;;  %v1098_v49 = vpop.f32.mrb[10].mxu1 }
 0x367   :  { %v1101_v50 = vmax.f32 %v1614_v58, 0.0  ;;  %v1103_v51 = vmax.f32 %v1616_v45, 0.0  ;;  %v935_v52 = vpop.f32.mrb[11].mxu0  ;;  %v1099_v53 = vpop.f32.mrb[11].mxu1 }
 0x368   :  { %v1102_v7 = vmax.f32 %v1615_v47, 0.0  ;;  %v1104_v54 = vmax.f32 %v1617_v48, 0.0 }
 0x369   :  { %v2086_v55 = vpack.c.bf16 %v1101_v50, %v1101_v50  ;;  %v2088_v5 = vpack.c.bf16 %v1103_v51, %v1103_v51 }
 0x36a   :  { %v1106_v10 = vpack.c.bf16 %v1102_v7, %v1102_v7  ;;  %v2090_v56 = vpack.c.bf16 %v1104_v54, %v1104_v54 }
 0x36b   :  { %1814 = dma.done.wait [#allocation8 + $0x2], 8192 }
 0x36c   :  { %1815 = vsyncadd [#allocation8 + $0x2], 4294959104  ;;  %1221 = vmatprep.mubr.bf16.mxu0 %v1106_v10  ;;  %v1114_v57 = vld [vmem:[#allocation4 + $0x8] sm:$0xff]  ;;  %v1113_v62 = vld [vmem:[#allocation4] sm:$0xff] }
 0x36d   :  { %v1116_v63 = vld [vmem:[#allocation4 + $0x18] sm:$0xff]  ;;  %1189 = vmatprep.subr.bf16.mxu0 %v1114_v57  ;;  %v1115_v0 = vld [vmem:[#allocation4 + $0x10] sm:$0xff]  ;;  %v1118_v2 = vld [vmem:[#allocation4 + $0x28] sm:$0xff] }
 0x36e   :  { %1190 = vmatpush1.bf16.msra.mxu0 %v1113_v62  ;;  %v1117_v3 = vld [vmem:[#allocation4 + $0x20] sm:$0xff]  ;;  %v1120_v4 = vld [vmem:[#allocation4 + $0x38] sm:$0xff]  ;;  %v1119_v8 = vld [vmem:[#allocation4 + $0x30] sm:$0xff] }
 0x36f   :  { %1191 = vmatprep.subr.bf16.mxu0 %v1116_v63  ;;  %v1122_v11 = vld [vmem:[#allocation4 + $0x48] sm:$0xff]  ;;  %v1121_v12 = vld [vmem:[#allocation4 + $0x40] sm:$0xff]  ;;  %v1124_v1 = vld [vmem:[#allocation4 + $0x58] sm:$0xff] }
 0x370   :  { %v1123_v13 = vld [vmem:[#allocation4 + $0x50] sm:$0xff]  ;;  %v1126_v14 = vld [vmem:[#allocation4 + $0x68] sm:$0xff]  ;;  %v1125_v15 = vld [vmem:[#allocation4 + $0x60] sm:$0xff] }
 0x371   :  { %v1128_v16 = vld [vmem:[#allocation4 + $0x78] sm:$0xff]  ;;  %v1127_v17 = vld [vmem:[#allocation4 + $0x70] sm:$0xff]  ;;  %v1130_v18 = vld [vmem:[#allocation4 + $0x88] sm:$0xff] }
 0x372   :  { %1192 = vmatpush1.bf16.msra.mxu0 %v1115_v0  ;;  %v1129_v19 = vld [vmem:[#allocation4 + $0x80] sm:$0xff]  ;;  %v1132_v20 = vld [vmem:[#allocation4 + $0x98] sm:$0xff]  ;;  %v1131_v21 = vld [vmem:[#allocation4 + $0x90] sm:$0xff] }
 0x373   :  { %1193 = vmatprep.subr.bf16.mxu0 %v1118_v2  ;;  %v1134_v22 = vld [vmem:[#allocation4 + $0xa8] sm:$0xff]  ;;  %v1133_v23 = vld [vmem:[#allocation4 + $0xa0] sm:$0xff]  ;;  %v1136_v24 = vld [vmem:[#allocation4 + $0xb8] sm:$0xff] }
 0x374   :  { %v1135_v25 = vld [vmem:[#allocation4 + $0xb0] sm:$0xff]  ;;  %v1138_v26 = vld [vmem:[#allocation4 + $0xc8] sm:$0xff]  ;;  %v1137_v27 = vld [vmem:[#allocation4 + $0xc0] sm:$0xff] }
 0x375   :  { %v1140_v30 = vld [vmem:[#allocation4 + $0xd8] sm:$0xff]  ;;  %v1139_v28 = vld [vmem:[#allocation4 + $0xd0] sm:$0xff]  ;;  %v1142_v29 = vld [vmem:[#allocation4 + $0xe8] sm:$0xff] }
 0x376   :  { %1194 = vmatpush1.bf16.msra.mxu0 %v1117_v3  ;;  %v1141_v32 = vld [vmem:[#allocation4 + $0xe0] sm:$0xff]  ;;  %v1144_v34 = vld [vmem:[#allocation4 + $0xf8] sm:$0xff]  ;;  %v1143_v33 = vld [vmem:[#allocation4 + $0xf0] sm:$0xff] }
 0x377   :  { %1195 = vmatprep.subr.bf16.mxu0 %v1120_v4  ;;  %v1146_v35 = vld [vmem:[#allocation4 + $0x108] sm:$0xff]  ;;  %v1145_v36 = vld [vmem:[#allocation4 + $0x100] sm:$0xff]  ;;  %v1148_v37 = vld [vmem:[#allocation4 + $0x118] sm:$0xff] }
 0x378   :  { %v1147_v38 = vld [vmem:[#allocation4 + $0x110] sm:$0xff]  ;;  %v1150_v31 = vld [vmem:[#allocation4 + $0x128] sm:$0xff]  ;;  %v1149_v39 = vld [vmem:[#allocation4 + $0x120] sm:$0xff] }
 0x379   :  { %v1152_v40 = vld [vmem:[#allocation4 + $0x138] sm:$0xff]  ;;  %v1151_v41 = vld [vmem:[#allocation4 + $0x130] sm:$0xff]  ;;  %v1154_v42 = vld [vmem:[#allocation4 + $0x148] sm:$0xff] }
 0x37a   :  { %1196 = vmatpush1.bf16.msra.mxu0 %v1119_v8  ;;  %v1153_v60 = vld [vmem:[#allocation4 + $0x140] sm:$0xff]  ;;  %v1156_v43 = vld [vmem:[#allocation4 + $0x158] sm:$0xff]  ;;  %v1155_v44 = vld [vmem:[#allocation4 + $0x150] sm:$0xff] }
 0x37b   :  { %1197 = vmatprep.subr.bf16.mxu0 %v1122_v11  ;;  %v1158_v58 = vld [vmem:[#allocation4 + $0x168] sm:$0xff]  ;;  %v1157_v45 = vld [vmem:[#allocation4 + $0x160] sm:$0xff]  ;;  %v1160_v46 = vld [vmem:[#allocation4 + $0x178] sm:$0xff] }
 0x37c   :  { %v1159_v59 = vld [vmem:[#allocation4 + $0x170] sm:$0xff]  ;;  %v1162_v47 = vld [vmem:[#allocation4 + $0x188] sm:$0xff]  ;;  %v1161_v48 = vld [vmem:[#allocation4 + $0x180] sm:$0xff] }
 0x37d   :  { %v1164_v61 = vld [vmem:[#allocation4 + $0x198] sm:$0xff]  ;;  %v1163_v49 = vld [vmem:[#allocation4 + $0x190] sm:$0xff]  ;;  %v1166_v50 = vld [vmem:[#allocation4 + $0x1a8] sm:$0xff] }
 0x37e   :  { %1198 = vmatpush1.bf16.msra.mxu0 %v1121_v12  ;;  %v1165_v51 = vld [vmem:[#allocation4 + $0x1a0] sm:$0xff]  ;;  %v1168_v52 = vld [vmem:[#allocation4 + $0x1b8] sm:$0xff]  ;;  %v1167_v53 = vld [vmem:[#allocation4 + $0x1b0] sm:$0xff] }
 0x37f   :  { %1199 = vmatprep.subr.bf16.mxu0 %v1124_v1  ;;  %v1170_v7 = vld [vmem:[#allocation4 + $0x1c8] sm:$0xff]  ;;  %v1169_v54 = vld [vmem:[#allocation4 + $0x1c0] sm:$0xff]  ;;  %v1171_v10 = vld [vmem:[#allocation4 + $0x1d0] sm:$0xff] }
 0x380   :  { %v1173_v57 = vld [vmem:[#allocation4 + $0x1e0] sm:$0xff]  ;;  %v1176_v62 = vld [vmem:[#allocation4 + $0x1f8] sm:$0xff]  ;;  %v1175_v63 = vld [vmem:[#allocation4 + $0x1f0] sm:$0xff] }
 0x381   :  { %v1177_v0 = vld [vmem:[%s2126_s3] sm:$0x3] }
 0x382   :  { %1200 = vmatpush1.bf16.msra.mxu0 %v1123_v13  ;;  %v1182_v2 = vrot.slane %v1177_v0, %v2032_v6  ;;  %v1186_v3 = vrot.slane %v1177_v0, %v2036_v9 }
 0x383   :  { %1201 = vmatprep.subr.bf16.mxu0 %v1126_v14 }
 0x386   :  { %1202 = vmatpush1.bf16.msra.mxu0 %v1125_v15 }
 0x387   :  { %1203 = vmatprep.subr.bf16.mxu0 %v1128_v16 }
 0x38a   :  { %1204 = vmatpush1.bf16.msra.mxu0 %v1127_v17 }
 0x38b   :  { %1205 = vmatprep.subr.bf16.mxu0 %v1130_v18 }
 0x38e   :  { %1206 = vmatpush1.bf16.msra.mxu0 %v1129_v19 }
 0x38f   :  { %1207 = vmatprep.subr.bf16.mxu0 %v1132_v20 }
 0x392   :  { %1208 = vmatpush1.bf16.msra.mxu0 %v1131_v21 }
 0x393   :  { %1209 = vmatprep.subr.bf16.mxu0 %v1134_v22 }
 0x396   :  { %1210 = vmatpush1.bf16.msra.mxu0 %v1133_v23 }
 0x397   :  { %1211 = vmatprep.subr.bf16.mxu0 %v1136_v24 }
 0x39a   :  { %1212 = vmatpush1.bf16.msra.mxu0 %v1135_v25 }
 0x39b   :  { %1213 = vmatprep.subr.bf16.mxu0 %v1138_v26 }
 0x39e   :  { %1214 = vmatpush1.bf16.msra.mxu0 %v1137_v27 }
 0x39f   :  { %1215 = vmatprep.subr.bf16.mxu0 %v1140_v30 }
 0x3a2   :  { %1216 = vmatpush1.bf16.msra.mxu0 %v1139_v28 }
 0x3a3   :  { %1217 = vmatprep.subr.bf16.mxu0 %v1142_v29 }
 0x3a6   :  { %1218 = vmatpush1.bf16.msra.mxu0 %v1141_v32 }
 0x3a7   :  { %1219 = vmatprep.subr.bf16.mxu0 %v1144_v34 }
 0x3aa   :  { %1220 = vmatpush1.bf16.msra.mxu0 %v1143_v33 }
 0x3ab   :  { %1230 = vmatprep.subr.bf16.mxu0 %v1146_v35 }
 0x3ad   :  { %1222 = vmatmul.mubr.bf16.vlgmr.msra.gmra.mrb[12].mxu0 %v2086_v55  ;;  %v1172_v55 = vld [vmem:[#allocation4 + $0x1d8] sm:$0xff] }
 0x3ae   :  { %1231 = vmatpush1.bf16.msra.mxu0 %v1145_v36  ;;  %1262 = vmatprep.mubr.bf16.mxu0 %v2090_v56  ;;  %v1174_v56 = vld [vmem:[#allocation4 + $0x1e8] sm:$0xff] }
 0x3af   :  { %1232 = vmatprep.subr.bf16.mxu0 %v1148_v37 }
 0x3b2   :  { %1233 = vmatpush1.bf16.msra.mxu0 %v1147_v38 }
 0x3b3   :  { %1234 = vmatprep.subr.bf16.mxu0 %v1150_v31 }
 0x3b6   :  { %1235 = vmatpush1.bf16.msra.mxu0 %v1149_v39 }
 0x3b7   :  { %1236 = vmatprep.subr.bf16.mxu0 %v1152_v40 }
 0x3ba   :  { %1237 = vmatpush1.bf16.msra.mxu0 %v1151_v41 }
 0x3bb   :  { %1238 = vmatprep.subr.bf16.mxu0 %v1154_v42 }
 0x3be   :  { %1239 = vmatpush1.bf16.msra.mxu0 %v1153_v60 }
 0x3bf   :  { %1240 = vmatprep.subr.bf16.mxu0 %v1156_v43 }
 0x3c2   :  { %1241 = vmatpush1.bf16.msra.mxu0 %v1155_v44 }
 0x3c3   :  { %1242 = vmatprep.subr.bf16.mxu0 %v1158_v58 }
 0x3c6   :  { %1243 = vmatpush1.bf16.msra.mxu0 %v1157_v45 }
 0x3c7   :  { %1244 = vmatprep.subr.bf16.mxu0 %v1160_v46 }
 0x3ca   :  { %1245 = vmatpush1.bf16.msra.mxu0 %v1159_v59 }
 0x3cb   :  { %1246 = vmatprep.subr.bf16.mxu0 %v1162_v47 }
 0x3ce   :  { %1247 = vmatpush1.bf16.msra.mxu0 %v1161_v48 }
 0x3cf   :  { %1248 = vmatprep.subr.bf16.mxu0 %v1164_v61 }
 0x3d2   :  { %1249 = vmatpush1.bf16.msra.mxu0 %v1163_v49 }
 0x3d3   :  { %1250 = vmatprep.subr.bf16.mxu0 %v1166_v50 }
 0x3d6   :  { %1251 = vmatpush1.bf16.msra.mxu0 %v1165_v51 }
 0x3d7   :  { %1252 = vmatprep.subr.bf16.mxu0 %v1168_v52 }
 0x3da   :  { %1253 = vmatpush1.bf16.msra.mxu0 %v1167_v53 }
 0x3db   :  { %1254 = vmatprep.subr.bf16.mxu0 %v1170_v7 }
 0x3de   :  { %1255 = vmatpush1.bf16.msra.mxu0 %v1169_v54 }
 0x3df   :  { %1256 = vmatprep.subr.bf16.mxu0 %v1172_v55 }
 0x3e2   :  { %1257 = vmatpush1.bf16.msra.mxu0 %v1171_v10 }
 0x3e3   :  { %1258 = vmatprep.subr.bf16.mxu0 %v1174_v56 }
 0x3e6   :  { %1259 = vmatpush1.bf16.msra.mxu0 %v1173_v57 }
 0x3e7   :  { %1260 = vmatprep.subr.bf16.mxu0 %v1176_v62 }
 0x3ea   :  { %1261 = vmatpush1.bf16.msra.mxu0 %v1175_v63 }
 0x3ed   :  { %1263 = vmatmul.mubr.bf16.vlgmr.msra.gmra.mrb[12].mxu0 %v2088_v5 }
 0x4c0   :  { %v1264_v4 = vpop.f32.mrb[12].mxu0 }
 0x4c1   :  { %v1618_v8 = vadd.f32 %v1264_v4, %v1182_v2  ;;  %v1266_v11 = vpop.f32.mrb[13].mxu0 }
 0x4c2   :  { %v1619_v12 = vadd.f32 %v1266_v11, %v1186_v3  ;;  %v1268_v1 = vpop.f32.mrb[14].mxu0 }
 0x4c3   :  { %v1271_v13 = vmax.f32 %v1618_v8, 0.0  ;;  %v1269_v14 = vpop.f32.mrb[15].mxu0 }
 0x4c4   :  { %v1272_v15 = vmax.f32 %v1619_v12, 0.0 }
 0x4c5   :  { %v1273_v16 = vpack.c.bf16 %v1271_v13, %v1271_v13 }
 0x4c6   :  { %v1274_v17 = vpack.c.bf16 %v1272_v15, %v1272_v15 }
 0x4c7   :  { %1816 = dma.done.wait [#allocation8 + $0x3], 2048 }
 0x4c8   :  { %1817 = vsyncadd [#allocation8 + $0x3], 4294965248  ;;  %1334 = vmatprep.mubr.bf16.mxu1 %v1274_v17  ;;  %v1287_v5 = vld [vmem:[#allocation5 + $0x40] sm:$0xff]  ;;  %v1288_v19 = vld [vmem:[#allocation5 + $0x48] sm:$0xff] }
 0x4c9   :  { %v1279_v18 = vld [vmem:[#allocation5] sm:$0xff]  ;;  %1534 = vmatprep.subr.bf16.mxu1 %v1287_v5  ;;  %v1280_v6 = vld [vmem:[#allocation5 + $0x8] sm:$0xff]  ;;  %v1289_v9 = vld [vmem:[#allocation5 + $0x50] sm:$0xff] }
 0x4ca   :  { %1535 = vmatpush3.bf16.msra.mxu1 %v1279_v18  ;;  %v1281_v20 = vld [vmem:[#allocation5 + $0x10] sm:$0xff]  ;;  %v1290_v21 = vld [vmem:[#allocation5 + $0x58] sm:$0xff]  ;;  %v1291_v23 = vld [vmem:[#allocation5 + $0x60] sm:$0xff] }
 0x4cb   :  { %1536 = vmatprep.subr.bf16.mxu1 %v1288_v19  ;;  %v1282_v22 = vld [vmem:[#allocation5 + $0x18] sm:$0xff]  ;;  %v1283_v24 = vld [vmem:[#allocation5 + $0x20] sm:$0xff]  ;;  %v1292_v25 = vld [vmem:[#allocation5 + $0x68] sm:$0xff] }
 0x4cc   :  { %v1284_v26 = vld [vmem:[#allocation5 + $0x28] sm:$0xff]  ;;  %v1293_v27 = vld [vmem:[#allocation5 + $0x70] sm:$0xff]  ;;  %v1294_v28 = vld [vmem:[#allocation5 + $0x78] sm:$0xff] }
 0x4cd   :  { %v1285_v30 = vld [vmem:[#allocation5 + $0x30] sm:$0xff]  ;;  %v1286_v29 = vld [vmem:[#allocation5 + $0x38] sm:$0xff]  ;;  %v1525_v34 = vld [vmem:[%s2127_s4] ss:$0 sm:$0xff] }
 0x4ce   :  { %1537 = vmatpush3.bf16.msra.mxu1 %v1280_v6 }
 0x4cf   :  { %1538 = vmatprep.subr.bf16.mxu1 %v1289_v9 }
 0x4d2   :  { %1539 = vmatpush3.bf16.msra.mxu1 %v1281_v20 }
 0x4d3   :  { %1540 = vmatprep.subr.bf16.mxu1 %v1290_v21 }
 0x4d6   :  { %1541 = vmatpush3.bf16.msra.mxu1 %v1282_v22 }
 0x4d7   :  { %1542 = vmatprep.subr.bf16.mxu1 %v1291_v23 }
 0x4da   :  { %1543 = vmatpush3.bf16.msra.mxu1 %v1283_v24 }
 0x4db   :  { %1544 = vmatprep.subr.bf16.mxu1 %v1292_v25 }
 0x4de   :  { %1545 = vmatpush3.bf16.msra.mxu1 %v1284_v26 }
 0x4df   :  { %1546 = vmatprep.subr.bf16.mxu1 %v1293_v27 }
 0x4e2   :  { %1547 = vmatpush3.bf16.msra.mxu1 %v1285_v30 }
 0x4e3   :  { %1548 = vmatprep.subr.bf16.mxu1 %v1294_v28 }
 0x4e6   :  { %1549 = vmatpush3.bf16.msra.mxu1 %v1286_v29 }
 0x4e9   :  { %1335 = vmatmul.mubr.bf16.vlgmr.msra.gmra.mrb[12].mxu1 %v1273_v16 }
 0x5bc   :  { %v1550_v32 = vpop.f32.mrb[12].mxu1 }
 0x5bd   :  { %v1551_v33 = vpop.f32.mrb[13].mxu1 }
 0x5be   :  { %v1552_v35 = vadd.f32 %v1551_v33, %v1550_v32  ;;  %v1553_v36 = vpop.f32.mrb[14].mxu1 }
 0x5bf   :  { %v1554_v37 = vpop.f32.mrb[15].mxu1 }
 0x5c0   :  { %v1337_v38 = vadd.f32 %v1552_v35, %v1525_v34 }
 0x5c2   :  { %v1342_v31 = vmax.f32 %v1337_v38, 0.0 }
 0x5c4   :  { %v1343_v39 = vpack.c.bf16 %v1342_v31, %v1342_v31 }
 0x5c5   :  { %1818 = dma.done.wait [#allocation8 + $0x4], 1024 }
 0x5c6   :  { %1819 = vsyncadd [#allocation8 + $0x4], 4294966272  ;;  %v1847_v40 = vmov 0.0   ;;  %vm1848_vm0 = vmmov 0   ;;  %v1347_v41 = vld [vmem:[#allocation6] sm:$0xff]  ;;  %v1348_v42 = vld [vmem:[#allocation6 + $0x8] sm:$0xff] }
 0x5c7   :  { %1574 = vmatprep.subr.bf16.mxu1 %v1847_v40  ;;  %1590 = vmatprep.mubr.msk.bf16.mxu1 %vm1848_vm0, %v1847_v40  ;;  %v1349_v60 = vld [vmem:[#allocation6 + $0x10] sm:$0xff]  ;;  %v1350_v43 = vld [vmem:[#allocation6 + $0x18] sm:$0xff]  ;;  %v1351_v44 = vld [vmem:[#allocation6 + $0x20] sm:$0xff] }
 0x5c8   :  { %1575 = vmatpush3.bf16.msra.mxu1 %v1347_v41  ;;  %v1352_v58 = vld [vmem:[#allocation6 + $0x28] sm:$0xff]  ;;  %v1353_v45 = vld [vmem:[#allocation6 + $0x30] sm:$0xff]  ;;  %v1354_v46 = vld [vmem:[#allocation6 + $0x38] sm:$0xff] }
 0x5c9   :  { %1576 = vmatprep.subr.bf16.mxu1 %v1847_v40  ;;  %v1526_v59 = vld [vmem:[%s2128_s5] ss:$0 sm:$0xff] }
 0x5cc   :  { %1577 = vmatpush3.bf16.msra.mxu1 %v1348_v42 }
 0x5cd   :  { %1578 = vmatprep.subr.bf16.mxu1 %v1847_v40 }
 0x5d0   :  { %1579 = vmatpush3.bf16.msra.mxu1 %v1349_v60 }
 0x5d1   :  { %1580 = vmatprep.subr.bf16.mxu1 %v1847_v40 }
 0x5d4   :  { %1581 = vmatpush3.bf16.msra.mxu1 %v1350_v43 }
 0x5d5   :  { %1582 = vmatprep.subr.bf16.mxu1 %v1847_v40 }
 0x5d8   :  { %1583 = vmatpush3.bf16.msra.mxu1 %v1351_v44 }
 0x5d9   :  { %1584 = vmatprep.subr.bf16.mxu1 %v1847_v40 }
 0x5dc   :  { %1585 = vmatpush3.bf16.msra.mxu1 %v1352_v58 }
 0x5dd   :  { %1586 = vmatprep.subr.bf16.mxu1 %v1847_v40 }
 0x5e0   :  { %1587 = vmatpush3.bf16.msra.mxu1 %v1353_v45 }
 0x5e1   :  { %1588 = vmatprep.subr.bf16.mxu1 %v1847_v40 }
 0x5e4   :  { %1589 = vmatpush3.bf16.msra.mxu1 %v1354_v46 }
 0x5e7   :  { %1591 = vmatmul.mubr.bf16.vlgmr.msra.gmra.mrb[16].mxu1 %v1343_v39 }
 0x6ba   :  { %v1396_v47 = vpop.f32.mrb[16].mxu1 }
 0x6bb   :  { %v1397_v48 = vadd.f32 %v1526_v59, %v1396_v47  ;;  %v1592_v61 = vpop.f32.mrb[17].mxu1 }
 0x6bc   :  { %v1399_v49 = vpop.f32.mrb[18].mxu1 }
 0x6bd   :  { %v1402_v50 = vmax.f32 %v1397_v48, 0.0  ;;  %v1593_v51 = vpop.f32.mrb[19].mxu1 }
 0x6bf   :  { %v1403_v52 = vpack.c.bf16 %v1402_v50, %v1402_v50 }
 0x6c0   :  { %1820 = dma.done.wait [#allocation8 + $0x5], 1024 }
 0x6c1   :  { %1821 = vsyncadd [#allocation8 + $0x5], 4294966272  ;;  %1594 = vmatprep.subr.bf16.mxu1 %v1847_v40  ;;  %1610 = vmatprep.mubr.msk.bf16.mxu1 %vm1848_vm0, %v1847_v40  ;;  %v1406_v53 = vld [vmem:[#allocation7] sm:$0xff]  ;;  %v1407_v7 = vld [vmem:[#allocation7 + $0x8] sm:$0xff]  ;;  %s1849_s20 = smov [#allocation14]  }
 0x6c2   :  { %1595 = vmatpush3.bf16.msra.mxu1 %v1406_v53  ;;  %v1408_v54 = vld [vmem:[#allocation7 + $0x10] sm:$0xff]  ;;  %v1409_v55 = vld [vmem:[#allocation7 + $0x18] sm:$0xff]  ;;  %v1410_v10 = vld [vmem:[#allocation7 + $0x20] sm:$0xff]  ;;  %s1468_s21 = sshll.u32 %s1849_s20, 4  ;;  %s1469_s21 = int_to_ptr.vmem [resolvable:$true] %s1468_s21 }
 0x6c3   :  { %1596 = vmatprep.subr.bf16.mxu1 %v1847_v40  ;;  %v1411_v56 = vld [vmem:[#allocation7 + $0x28] sm:$0xff]  ;;  %v1412_v57 = vld [vmem:[#allocation7 + $0x30] sm:$0xff]  ;;  %v1413_v62 = vld [vmem:[#allocation7 + $0x38] sm:$0xff]  ;;  %s1784_s25 = scalar_lea.vmem %s1469_s21, 128  ;;  %p1789_p13 = scmp.lt.s32.totalorder %s1469_s21, %s1469_s21 }
 0x6c4   :  { %v1527_v63 = vld [vmem:[%s2129_s6] ss:$0 sm:$0xff]  ;;  %p1785_p12 = scmp.ne.s32.totalorder %s1469_s21, %s1784_s25  ;;  %p1790_p0 = scmp.lt.s32.totalorder %s1784_s25, %s1784_s25 }
 0x6c6   :  { %1597 = vmatpush3.bf16.msra.mxu1 %v1407_v7  ;;  %p1791_p1 = por %p1790_p0, %p1789_p13 }
 0x6c7   :  { %1598 = vmatprep.subr.bf16.mxu1 %v1847_v40 }
 0x6c8   :  { %p1792_p2 = pnand %p1791_p1, %p1785_p12 }
 0x6ca   :  { %1599 = vmatpush3.bf16.msra.mxu1 %v1408_v54 }
 0x6cb   :  { %1600 = vmatprep.subr.bf16.mxu1 %v1847_v40 }
 0x6ce   :  { %1601 = vmatpush3.bf16.msra.mxu1 %v1409_v55 }
 0x6cf   :  { %1602 = vmatprep.subr.bf16.mxu1 %v1847_v40 }
 0x6d2   :  { %1603 = vmatpush3.bf16.msra.mxu1 %v1410_v10 }
 0x6d3   :  { %1604 = vmatprep.subr.bf16.mxu1 %v1847_v40 }
 0x6d6   :  { %1605 = vmatpush3.bf16.msra.mxu1 %v1411_v56 }
 0x6d7   :  { %1606 = vmatprep.subr.bf16.mxu1 %v1847_v40 }
 0x6da   :  { %1607 = vmatpush3.bf16.msra.mxu1 %v1412_v57 }
 0x6db   :  { %1608 = vmatprep.subr.bf16.mxu1 %v1847_v40 }
 0x6de   :  { %1609 = vmatpush3.bf16.msra.mxu1 %v1413_v62 }
 0x6e1   :  { %1611 = vmatmul.mubr.bf16.vlgmr.msra.gmra.mrb[20].mxu1 %v1403_v52 }
 0x7b4   :  { %v1455_v0 = vpop.f32.mrb[20].mxu1 }
 0x7b5   :  { %v1456_v2 = vadd.f32 %v1527_v63, %v1455_v0  ;;  %v1612_v3 = vpop.f32.mrb[21].mxu1 }
 0x7b6   :  { %v1458_v4 = vpop.f32.mrb[22].mxu1 }
 0x7b7   :  { %1461 = vst [vmem:[#allocation14] sm:$0xff] %v1456_v2  ;;  %v1613_v8 = vpop.f32.mrb[23].mxu1 }
 0x7b8   :  { %1795 = shalt.err (!%p1792_p2)
}
 0x7b9   :  { %s1796_s6 = scalar_lea.hbm %s2136_s13, 128 }
 0x7ba   :  { %p1797_p3 = scmp.ne.s32.totalorder %s2136_s13, %s1796_s6  ;;  %p1800_p4 = scmp.lt.u32.totalorder %s1796_s6, %s2136_s13 }
 0x7bc   :  { %p1802_p5 = pnand %p1800_p4, %p1797_p3 }
 0x7be   :  { %1805 = shalt.err (!%p1802_p5)
}
 0x7bf   :  { %1471 = dma.vmem_to_hbm [thread:$0]  %s1469_s21, 128, %s2136_s13, [#allocation11]  }
 0x7c0   :  { %1822 = dma.done.wait [#allocation11], 128  }
 0x7c1   :  { %1823 = vsyncadd [#allocation11], 4294967168 }
 0x7c2   :  { %1475 = vsyncpa [#allocation10], 1 }
 0x7c3   :  { %1476 = vsyncpa [#allocation13], 1 }
 0x7c4   :  { %1477 = vsyncpa [#allocation11], 1 }
 0x7c5   :  { %1478 = vsyncmov [#allocation8] }
 0x7c8   :  { %s1479_s22 = vpop.sfrf %1478 }
 0x7c9   :  { %p1528_p6 = scmp.ne.s32.totalorder %s1479_s22, 0 }
 0x7cb   :  { %1483 = shalt.err (%p1528_p6)  }
 0x7cc   :  { %1485 = vsyncmov [#allocation8 + $0x1] }
 0x7cf   :  { %s1486_s15 = vpop.sfrf %1485 }
 0x7d0   :  { %p1529_p7 = scmp.ne.s32.totalorder %s1486_s15, 0 }
 0x7d2   :  { %1490 = shalt.err (%p1529_p7)  }
 0x7d3   :  { %1492 = vsyncmov [#allocation8 + $0x2] }
 0x7d6   :  { %s1493_s1 = vpop.sfrf %1492 }
 0x7d7   :  { %p1530_p8 = scmp.ne.s32.totalorder %s1493_s1, 0 }
 0x7d9   :  { %1497 = shalt.err (%p1530_p8)  }
 0x7da   :  { %1499 = vsyncmov [#allocation8 + $0x3] }
 0x7dd   :  { %s1500_s16 = vpop.sfrf %1499 }
 0x7de   :  { %p1531_p9 = scmp.ne.s32.totalorder %s1500_s16, 0 }
 0x7e0   :  { %1504 = shalt.err (%p1531_p9)  }
 0x7e1   :  { %1506 = vsyncmov [#allocation8 + $0x4] }
 0x7e4   :  { %s1507_s13 = vpop.sfrf %1506 }
 0x7e5   :  { %p1532_p10 = scmp.ne.s32.totalorder %s1507_s13, 0 }
 0x7e7   :  { %1511 = shalt.err (%p1532_p10)  }
 0x7e8   :  { %1513 = vsyncmov [#allocation8 + $0x5] }
 0x7eb   :  { %s1514_s18 = vpop.sfrf %1513 }
 0x7ec   :  { %p1533_p11 = scmp.ne.s32.totalorder %s1514_s18, 0 }
 0x7ee   :  { %1518 = shalt.err (%p1533_p11)  }

</bundles_post_ra>
